<compile_context>
chip_gen: v7x
topology: tpu7x:2x2x1
jax: 0.10.0
libtpu: 0.0.40
codegen_flags: <defaults>
</compile_context>

<pallas_src>
import functools

import jax
import jax.numpy as jnp
from jax import lax
from jax.experimental import pallas as pl
from jax.experimental.pallas import tpu as pltpu


# ----------------------------------------------------------------------------
# In-kernel building blocks (operate on VMEM-resident values)
# ----------------------------------------------------------------------------
def _shifted_rows(h, d):
    """s[l] = h[l + d] for valid rows, 0 outside (implicit zero 'same' pad).

    Implemented as a tiny 0/1 selection matmul so lowering is trivial
    (iota/compare/dot) and the work rides the otherwise-idle MXU.
    """
    L = h.shape[0]
    ri = lax.broadcasted_iota(jnp.int32, (L, L), 0)
    ci = lax.broadcasted_iota(jnp.int32, (L, L), 1)
    sel = (ci == ri + d).astype(h.dtype)
    return jnp.dot(sel, h, preferred_element_type=jnp.float32)


def _conv1d_bn(h, w_ref, s_ref, b_ref, *, relu, res=None):
    """'Same' Conv1d + folded BatchNorm (+residual) (+ReLU).

    h:     (L, Cin) fp32 activation value.
    w_ref: bf16 weight ref, either (K, Cin, Cout) (per-tap path) or
           (K*Cin, Cout) (im2col path, one MXU push with deep contraction).
    s_ref/b_ref: (1, Cout) fp32 folded-BN scale / bias.
    """
    L, cin = h.shape
    if len(w_ref.shape) == 3:
        # Per-tap accumulation (small / non-lane-aligned Cin).
        K = w_ref.shape[0]
        pad = K // 2
        acc = None
        for k in range(K):
            col = h if k == pad else _shifted_rows(h, k - pad)
            t = jnp.dot(col.astype(jnp.bfloat16), w_ref[k],
                        preferred_element_type=jnp.float32)
            acc = t if acc is None else acc + t
    else:
        # im2col: single matmul, contraction depth K*Cin (lane-aligned concat).
        K = w_ref.shape[0] // cin
        pad = K // 2
        if K == 1:
            xim = h
        else:
            cols = [h if k == pad else _shifted_rows(h, k - pad)
                    for k in range(K)]
            xim = jnp.concatenate(cols, axis=-1)          # (L, K*Cin)
        acc = jnp.dot(xim.astype(jnp.bfloat16), w_ref[...],
                      preferred_element_type=jnp.float32)
    acc = acc * s_ref[...] + b_ref[...]                    # fp32 epilogue
    if res is not None:
        acc = acc + res
    if relu:
        acc = jnp.maximum(acc, 0.0)
    return acc


def _res_block(h, p):
    out = _conv1d_bn(h, p["w1"], p["s1"], p["b1"], relu=True)
    if "wd" in p:                                          # 1x1 conv + bn downsample
        res = _conv1d_bn(h, p["wd"], p["sd"], p["bd"], relu=False)
    else:
        res = h
    return _conv1d_bn(out, p["w2"], p["s2"], p["b2"], relu=True, res=res)


def _maxpool2(h):
    """MaxPool1d(2, stride=2) along rows via two 0/1 selection matmuls
    (no strided sublane slicing / value reshapes)."""
    L = h.shape[0]
    Lh = L // 2
    ri = lax.broadcasted_iota(jnp.int32, (Lh, L), 0)
    ci = lax.broadcasted_iota(jnp.int32, (Lh, L), 1)
    even = (ci == 2 * ri).astype(h.dtype)
    odd = (ci == 2 * ri + 1).astype(h.dtype)
    return jnp.maximum(
        jnp.dot(even, h, preferred_element_type=jnp.float32),
        jnp.dot(odd, h, preferred_element_type=jnp.float32))


# ----------------------------------------------------------------------------
# Fused whole-network kernel (one batch element per grid step)
# ----------------------------------------------------------------------------
def _res_encoder_kernel(x_ref, *refs, treedef, n_params):
    param_refs = refs[:n_params]
    out_ref = refs[n_params]
    P = jax.tree_util.tree_unflatten(treedef, list(param_refs))

    h = x_ref[0].astype(jnp.float32)                       # (L, Cin)

    h = _res_block(h, P["layer1"])
    h = _maxpool2(h)
    h = _res_block(h, P["layer2"])
    h = _maxpool2(h)
    h = _res_block(h, P["layer3"])

    # Head: x[:, C/2:, :] * softmax(x[:, :C/2, :], dim=channel), sum over L, fc.
    ch = h.shape[1] // 2
    logits = h[:, :ch]
    vals = h[:, ch:]
    logits = logits - jnp.max(logits, axis=-1, keepdims=True)
    p = jnp.exp(logits)
    p = p / jnp.sum(p, axis=-1, keepdims=True)
    s = jnp.sum(vals * p, axis=0, keepdims=True)           # (1, ch)
    out = jnp.dot(s, P["fc_w"][...], preferred_element_type=jnp.float32)
    out_ref[0] = (out + P["fc_b"][...]).astype(out_ref.dtype)


def _bcast_imap(rank):
    zeros = (0,) * rank
    return lambda b: zeros


def res_encoder_forward(x, params):
    """x: (B, L, Cin) -> (B, num_classes).  Single fused pallas_call."""
    B, L, Cin = x.shape
    assert L % 4 == 0, "two MaxPool1d(2,2) stages require L divisible by 4"

    # Kernel-ready parameter tree: conv weights im2col-folded to (K*Cin, Cout)
    # when lane-aligned; BN scale/bias and fc bias as (1, C) rows.
    kp = {}
    for name in ("layer1", "layer2", "layer3"):
        blk = params[name]
        q = {}
        for wk, sk, bk in (("w1", "s1", "b1"), ("w2", "s2", "b2"),
                           ("wd", "sd", "bd")):
            if wk not in blk:
                continue
            w = blk[wk]
            K, ci, co = w.shape
            assert K % 2 == 1, "'same' padding (pad = K//2) assumes odd K"
            q[wk] = w.reshape(K * ci, co) if (K > 1 and ci % 128 == 0) else w
            q[sk] = blk[sk].reshape(1, co)
            q[bk] = blk[bk].reshape(1, co)
        kp[name] = q
    nc = params["fc_w"].shape[1]
    kp["fc_w"] = params["fc_w"]
    kp["fc_b"] = params["fc_b"].reshape(1, nc)

    leaves, treedef = jax.tree_util.tree_flatten(kp)
    kernel = functools.partial(_res_encoder_kernel, treedef=treedef,
                               n_params=len(leaves))

    param_specs = [pl.BlockSpec(tuple(leaf.shape), _bcast_imap(leaf.ndim))
                   for leaf in leaves]

    out = pl.pallas_call(
        kernel,
        out_shape=jax.ShapeDtypeStruct((B, 1, nc), x.dtype),
        grid=(B,),
        in_specs=[pl.BlockSpec((1, L, Cin), lambda b: (b, 0, 0))] + param_specs,
        out_specs=pl.BlockSpec((1, 1, nc), lambda b: (b, 0, 0)),
        compiler_params=pltpu.CompilerParams(
            dimension_semantics=("parallel",)),   # B>=2 keeps both v7x TCs busy
    )(x, *leaves)
    return out.reshape(B, nc)


# ----------------------------------------------------------------------------
# Deterministic parameter init (shapes follow ResEncoder.__init__)
# ----------------------------------------------------------------------------
def _make_conv(key, K, cin, cout):
    w = jax.random.normal(key, (K, cin, cout)) / jnp.sqrt(float(K * cin))
    return w.astype(jnp.bfloat16)          # bf16 MXU operands


def _make_bn(key, c, eps=1e-5):
    k1, k2, k3, k4 = jax.random.split(key, 4)
    gamma = 1.0 + 0.1 * jax.random.normal(k1, (c,))
    beta = 0.1 * jax.random.normal(k2, (c,))
    mean = 0.1 * jax.random.normal(k3, (c,))
    var = 0.5 + jax.random.uniform(k4, (c,))
    scale = gamma / jnp.sqrt(var + eps)
    bias = beta - mean * scale
    return scale.astype(jnp.float32), bias.astype(jnp.float32)


def _make_block(key, cin, cout, K):
    keys = jax.random.split(key, 6)
    p = {"w1": _make_conv(keys[0], K, cin, cout)}
    p["s1"], p["b1"] = _make_bn(keys[1], cout)
    p["w2"] = _make_conv(keys[2], K, cout, cout)
    p["s2"], p["b2"] = _make_bn(keys[3], cout)
    if cin != cout:                        # downsample: 1x1 conv + bn
        p["wd"] = _make_conv(keys[4], 1, cin, cout)
        p["sd"], p["bd"] = _make_bn(keys[5], cout)
    return p


def init_params(key, kernel_size, in_planes=10, num_classes=6):
    k1, k2, k3, k4, k5 = jax.random.split(key, 5)
    return {
        "layer1": _make_block(k1, in_planes, 64, kernel_size[0]),
        "layer2": _make_block(k2, 64, 128, kernel_size[1]),
        "layer3": _make_block(k3, 128, 128, kernel_size[2]),
        # nn.Linear(64, num_classes): stored pre-transposed as (64, num_classes)
        "fc_w": (jax.random.normal(k4, (64, num_classes)) / 8.0).astype(jnp.float32),
        "fc_b": (0.1 * jax.random.normal(k5, (num_classes,))).astype(jnp.float32),
    }


# ----------------------------------------------------------------------------
# Pure-JAX reference (same math & dtypes, no Pallas) for a sanity check
# ----------------------------------------------------------------------------
def _forward_ref(x, params):
    def conv_bn_ref(x, w, s, b):
        K = w.shape[0]
        pad = K // 2
        L = x.shape[1]
        xp = jnp.pad(x, ((0, 0), (pad, K - 1 - pad), (0, 0)))
        out = 0.0
        for k in range(K):
            out = out + jnp.einsum("blc,cd->bld",
                                   xp[:, k:k + L, :].astype(jnp.bfloat16), w[k],
                                   preferred_element_type=jnp.float32)
        return out * s + b

    def block_ref(x, p):
        out = jnp.maximum(conv_bn_ref(x, p["w1"], p["s1"], p["b1"]), 0.0)
        res = conv_bn_ref(x, p["wd"], p["sd"], p["bd"]) if "wd" in p else x
        out = conv_bn_ref(out, p["w2"], p["s2"], p["b2"]) + res
        return jnp.maximum(out, 0.0)

    def pool_ref(x):
        B, L, C = x.shape
        return jnp.max(x.reshape(B, L // 2, 2, C), axis=2)

    h = pool_ref(block_ref(x, params["layer1"]))
    h = pool_ref(block_ref(h, params["layer2"]))
    h = block_ref(h, params["layer3"])
    Ch = h.shape[-1] // 2
    p = jax.nn.softmax(h[..., :Ch], axis=-1)
    s = jnp.sum(h[..., Ch:] * p, axis=1)
    return s @ params["fc_w"] + params["fc_b"]


# ----------------------------------------------------------------------------
if __name__ == "__main__":
    import numpy as np

    key = jax.random.PRNGKey(0)
    kx, kp = jax.random.split(key)

    B, Cin, L = 2, 10, 16                  # PyTorch input: (N, C=in_planes, L)
    kernel_size = (3, 5, 3)
    num_classes = 6

    x_ncl = jax.random.normal(kx, (B, Cin, L), jnp.float32)
    params = init_params(kp, kernel_size, in_planes=Cin, num_classes=num_classes)

    x_blc = jnp.transpose(x_ncl, (0, 2, 1))      # NCL -> (B, L, C) kernel layout

    out = res_encoder_forward(x_blc, params)
    out = jax.block_until_ready(out)
    assert out.shape == (B, num_classes)

    ref = _forward_ref(x_blc, params)
    np.testing.assert_allclose(np.asarray(out), np.asarray(ref),
                               rtol=2e-2, atol=2e-2)

    print("KERNEL_OK")
</pallas_src>

<mosaic_0001>
module attributes {stable_mosaic.version = 11 : i64} {
  func.func @_res_encoder_kernel(%arg0: i32, %arg1: memref<1x16x10xf32, #tpu.memory_space<vmem>>, %arg2: memref<1x6xf32, #tpu.memory_space<vmem>>, %arg3: memref<64x6xf32, #tpu.memory_space<vmem>>, %arg4: memref<1x64xf32, #tpu.memory_space<vmem>>, %arg5: memref<1x64xf32, #tpu.memory_space<vmem>>, %arg6: memref<1x64xf32, #tpu.memory_space<vmem>>, %arg7: memref<1x64xf32, #tpu.memory_space<vmem>>, %arg8: memref<1x64xf32, #tpu.memory_space<vmem>>, %arg9: memref<1x64xf32, #tpu.memory_space<vmem>>, %arg10: memref<3x10x64xbf16, #tpu.memory_space<vmem>>, %arg11: memref<3x64x64xbf16, #tpu.memory_space<vmem>>, %arg12: memref<1x10x64xbf16, #tpu.memory_space<vmem>>, %arg13: memref<1x128xf32, #tpu.memory_space<vmem>>, %arg14: memref<1x128xf32, #tpu.memory_space<vmem>>, %arg15: memref<1x128xf32, #tpu.memory_space<vmem>>, %arg16: memref<1x128xf32, #tpu.memory_space<vmem>>, %arg17: memref<1x128xf32, #tpu.memory_space<vmem>>, %arg18: memref<1x128xf32, #tpu.memory_space<vmem>>, %arg19: memref<5x64x128xbf16, #tpu.memory_space<vmem>>, %arg20: memref<640x128xbf16, #tpu.memory_space<vmem>>, %arg21: memref<1x64x128xbf16, #tpu.memory_space<vmem>>, %arg22: memref<1x128xf32, #tpu.memory_space<vmem>>, %arg23: memref<1x128xf32, #tpu.memory_space<vmem>>, %arg24: memref<1x128xf32, #tpu.memory_space<vmem>>, %arg25: memref<1x128xf32, #tpu.memory_space<vmem>>, %arg26: memref<384x128xbf16, #tpu.memory_space<vmem>>, %arg27: memref<384x128xbf16, #tpu.memory_space<vmem>>, %arg28: memref<1x1x6xf32, #tpu.memory_space<vmem>>) attributes {dimension_semantics = [#tpu.dimension_semantics<parallel>], iteration_bounds = array<i64: 2>, scalar_prefetch = 0 : i64, scratch_operands = 0 : i64, tpu.core_type = #tpu.core_type<tc>, window_params = [{transform_indices = @transform_0, window_bounds = array<i64: 1, 16, 10>}, {pipeline_mode = #tpu.pipeline_mode<synchronous>, transform_indices = @transform_1, window_bounds = array<i64: 1, 6>}, {pipeline_mode = #tpu.pipeline_mode<synchronous>, transform_indices = @transform_2, window_bounds = array<i64: 64, 6>}, {pipeline_mode = #tpu.pipeline_mode<synchronous>, transform_indices = @transform_3, window_bounds = array<i64: 1, 64>}, {pipeline_mode = #tpu.pipeline_mode<synchronous>, transform_indices = @transform_4, window_bounds = array<i64: 1, 64>}, {pipeline_mode = #tpu.pipeline_mode<synchronous>, transform_indices = @transform_5, window_bounds = array<i64: 1, 64>}, {pipeline_mode = #tpu.pipeline_mode<synchronous>, transform_indices = @transform_6, window_bounds = array<i64: 1, 64>}, {pipeline_mode = #tpu.pipeline_mode<synchronous>, transform_indices = @transform_7, window_bounds = array<i64: 1, 64>}, {pipeline_mode = #tpu.pipeline_mode<synchronous>, transform_indices = @transform_8, window_bounds = array<i64: 1, 64>}, {pipeline_mode = #tpu.pipeline_mode<synchronous>, transform_indices = @transform_9, window_bounds = array<i64: 3, 10, 64>}, {pipeline_mode = #tpu.pipeline_mode<synchronous>, transform_indices = @transform_10, window_bounds = array<i64: 3, 64, 64>}, {pipeline_mode = #tpu.pipeline_mode<synchronous>, transform_indices = @transform_11, window_bounds = array<i64: 1, 10, 64>}, {pipeline_mode = #tpu.pipeline_mode<synchronous>, transform_indices = @transform_12, window_bounds = array<i64: 1, 128>}, {pipeline_mode = #tpu.pipeline_mode<synchronous>, transform_indices = @transform_13, window_bounds = array<i64: 1, 128>}, {pipeline_mode = #tpu.pipeline_mode<synchronous>, transform_indices = @transform_14, window_bounds = array<i64: 1, 128>}, {pipeline_mode = #tpu.pipeline_mode<synchronous>, transform_indices = @transform_15, window_bounds = array<i64: 1, 128>}, {pipeline_mode = #tpu.pipeline_mode<synchronous>, transform_indices = @transform_16, window_bounds = array<i64: 1, 128>}, {pipeline_mode = #tpu.pipeline_mode<synchronous>, transform_indices = @transform_17, window_bounds = array<i64: 1, 128>}, {pipeline_mode = #tpu.pipeline_mode<synchronous>, transform_indices = @transform_18, window_bounds = array<i64: 5, 64, 128>}, {pipeline_mode = #tpu.pipeline_mode<synchronous>, transform_indices = @transform_19, window_bounds = array<i64: 640, 128>}, {pipeline_mode = #tpu.pipeline_mode<synchronous>, transform_indices = @transform_20, window_bounds = array<i64: 1, 64, 128>}, {pipeline_mode = #tpu.pipeline_mode<synchronous>, transform_indices = @transform_21, window_bounds = array<i64: 1, 128>}, {pipeline_mode = #tpu.pipeline_mode<synchronous>, transform_indices = @transform_22, window_bounds = array<i64: 1, 128>}, {pipeline_mode = #tpu.pipeline_mode<synchronous>, transform_indices = @transform_23, window_bounds = array<i64: 1, 128>}, {pipeline_mode = #tpu.pipeline_mode<synchronous>, transform_indices = @transform_24, window_bounds = array<i64: 1, 128>}, {pipeline_mode = #tpu.pipeline_mode<synchronous>, transform_indices = @transform_25, window_bounds = array<i64: 384, 128>}, {pipeline_mode = #tpu.pipeline_mode<synchronous>, transform_indices = @transform_26, window_bounds = array<i64: 384, 128>}, {transform_indices = @transform_27, window_bounds = array<i64: 1, 1, 6>}]} {
    %c0 = arith.constant 0 : index
    %c0_0 = arith.constant 0 : index
    %c0_1 = arith.constant 0 : index
    %0 = vector.load %arg1[%c0, %c0_0, %c0_1] : memref<1x16x10xf32, #tpu.memory_space<vmem>>, vector<1x16x10xf32>
    %1 = vector.shape_cast %0 : vector<1x16x10xf32> to vector<16x10xf32>
    %2 = tpu.iota {dimensions = array<i32: 0>} : vector<16x16xi32>
    %3 = tpu.iota {dimensions = array<i32: 1>} : vector<16x16xi32>
    %c-1_i32 = arith.constant -1 : i32
    %4 = vector.broadcast %c-1_i32 : i32 to vector<16x16xi32>
    %5 = arith.addi %2, %4 : vector<16x16xi32>
    %6 = arith.cmpi eq, %3, %5 : vector<16x16xi32>
    %7 = arith.extui %6 : vector<16x16xi1> to vector<16x16xi32>
    %8 = arith.sitofp %7 : vector<16x16xi32> to vector<16x16xf32>
    %cst = arith.constant dense<0.000000e+00> : vector<16x10xf32>
    %9 = tpu.matmul %8, %1, %cst {dimension_numbers = #tpu.dot_dimension_numbers<[1], [0], [0], [1], [0, 0, 1, 1], [], []>} : vector<16x16xf32>, vector<16x10xf32>, vector<16x10xf32> -> vector<16x10xf32>
    %10 = arith.truncf %9 : vector<16x10xf32> to vector<16x10xbf16>
    %c0_2 = arith.constant 0 : index
    %c0_3 = arith.constant 0 : index
    %c0_4 = arith.constant 0 : index
    %11 = vector.load %arg10[%c0_2, %c0_3, %c0_4] : memref<3x10x64xbf16, #tpu.memory_space<vmem>>, vector<1x10x64xbf16>
    %12 = vector.shape_cast %11 : vector<1x10x64xbf16> to vector<10x64xbf16>
    %cst_5 = arith.constant dense<0.000000e+00> : vector<16x64xf32>
    %13 = tpu.matmul %10, %12, %cst_5 {dimension_numbers = #tpu.dot_dimension_numbers<[1], [0], [0], [1], [0, 0, 1, 1], [], []>} : vector<16x10xbf16>, vector<10x64xbf16>, vector<16x64xf32> -> vector<16x64xf32>
    %14 = arith.truncf %1 : vector<16x10xf32> to vector<16x10xbf16>
    %c1 = arith.constant 1 : index
    %c0_6 = arith.constant 0 : index
    %c0_7 = arith.constant 0 : index
    %15 = vector.load %arg10[%c1, %c0_6, %c0_7] : memref<3x10x64xbf16, #tpu.memory_space<vmem>>, vector<1x10x64xbf16>
    %16 = vector.shape_cast %15 : vector<1x10x64xbf16> to vector<10x64xbf16>
    %cst_8 = arith.constant dense<0.000000e+00> : vector<16x64xf32>
    %17 = tpu.matmul %14, %16, %cst_8 {dimension_numbers = #tpu.dot_dimension_numbers<[1], [0], [0], [1], [0, 0, 1, 1], [], []>} : vector<16x10xbf16>, vector<10x64xbf16>, vector<16x64xf32> -> vector<16x64xf32>
    %18 = arith.addf %13, %17 : vector<16x64xf32>
    %19 = tpu.iota {dimensions = array<i32: 0>} : vector<16x16xi32>
    %20 = tpu.iota {dimensions = array<i32: 1>} : vector<16x16xi32>
    %c1_i32 = arith.constant 1 : i32
    %21 = vector.broadcast %c1_i32 : i32 to vector<16x16xi32>
    %22 = arith.addi %19, %21 : vector<16x16xi32>
    %23 = arith.cmpi eq, %20, %22 : vector<16x16xi32>
    %24 = arith.extui %23 : vector<16x16xi1> to vector<16x16xi32>
    %25 = arith.sitofp %24 : vector<16x16xi32> to vector<16x16xf32>
    %cst_9 = arith.constant dense<0.000000e+00> : vector<16x10xf32>
    %26 = tpu.matmul %25, %1, %cst_9 {dimension_numbers = #tpu.dot_dimension_numbers<[1], [0], [0], [1], [0, 0, 1, 1], [], []>} : vector<16x16xf32>, vector<16x10xf32>, vector<16x10xf32> -> vector<16x10xf32>
    %27 = arith.truncf %26 : vector<16x10xf32> to vector<16x10xbf16>
    %c2 = arith.constant 2 : index
    %c0_10 = arith.constant 0 : index
    %c0_11 = arith.constant 0 : index
    %28 = vector.load %arg10[%c2, %c0_10, %c0_11] : memref<3x10x64xbf16, #tpu.memory_space<vmem>>, vector<1x10x64xbf16>
    %29 = vector.shape_cast %28 : vector<1x10x64xbf16> to vector<10x64xbf16>
    %cst_12 = arith.constant dense<0.000000e+00> : vector<16x64xf32>
    %30 = tpu.matmul %27, %29, %cst_12 {dimension_numbers = #tpu.dot_dimension_numbers<[1], [0], [0], [1], [0, 0, 1, 1], [], []>} : vector<16x10xbf16>, vector<10x64xbf16>, vector<16x64xf32> -> vector<16x64xf32>
    %31 = arith.addf %18, %30 : vector<16x64xf32>
    %c0_13 = arith.constant 0 : index
    %c0_14 = arith.constant 0 : index
    %32 = vector.load %arg7[%c0_13, %c0_14] : memref<1x64xf32, #tpu.memory_space<vmem>>, vector<1x64xf32>
    %33 = vector.broadcast %32 : vector<1x64xf32> to vector<16x64xf32>
    %34 = arith.mulf %31, %33 : vector<16x64xf32>
    %c0_15 = arith.constant 0 : index
    %c0_16 = arith.constant 0 : index
    %35 = vector.load %arg4[%c0_15, %c0_16] : memref<1x64xf32, #tpu.memory_space<vmem>>, vector<1x64xf32>
    %36 = vector.broadcast %35 : vector<1x64xf32> to vector<16x64xf32>
    %37 = arith.addf %34, %36 : vector<16x64xf32>
    %cst_17 = arith.constant 0.000000e+00 : f32
    %38 = vector.broadcast %cst_17 : f32 to vector<16x64xf32>
    %39 = arith.maximumf %37, %38 : vector<16x64xf32>
    %40 = arith.truncf %1 : vector<16x10xf32> to vector<16x10xbf16>
    %c0_18 = arith.constant 0 : index
    %c0_19 = arith.constant 0 : index
    %c0_20 = arith.constant 0 : index
    %41 = vector.load %arg12[%c0_18, %c0_19, %c0_20] : memref<1x10x64xbf16, #tpu.memory_space<vmem>>, vector<1x10x64xbf16>
    %42 = vector.shape_cast %41 : vector<1x10x64xbf16> to vector<10x64xbf16>
    %cst_21 = arith.constant dense<0.000000e+00> : vector<16x64xf32>
    %43 = tpu.matmul %40, %42, %cst_21 {dimension_numbers = #tpu.dot_dimension_numbers<[1], [0], [0], [1], [0, 0, 1, 1], [], []>} : vector<16x10xbf16>, vector<10x64xbf16>, vector<16x64xf32> -> vector<16x64xf32>
    %c0_22 = arith.constant 0 : index
    %c0_23 = arith.constant 0 : index
    %44 = vector.load %arg9[%c0_22, %c0_23] : memref<1x64xf32, #tpu.memory_space<vmem>>, vector<1x64xf32>
    %45 = vector.broadcast %44 : vector<1x64xf32> to vector<16x64xf32>
    %46 = arith.mulf %43, %45 : vector<16x64xf32>
    %c0_24 = arith.constant 0 : index
    %c0_25 = arith.constant 0 : index
    %47 = vector.load %arg6[%c0_24, %c0_25] : memref<1x64xf32, #tpu.memory_space<vmem>>, vector<1x64xf32>
    %48 = vector.broadcast %47 : vector<1x64xf32> to vector<16x64xf32>
    %49 = arith.addf %46, %48 : vector<16x64xf32>
    %50 = tpu.iota {dimensions = array<i32: 0>} : vector<16x16xi32>
    %51 = tpu.iota {dimensions = array<i32: 1>} : vector<16x16xi32>
    %c-1_i32_26 = arith.constant -1 : i32
    %52 = vector.broadcast %c-1_i32_26 : i32 to vector<16x16xi32>
    %53 = arith.addi %50, %52 : vector<16x16xi32>
    %54 = arith.cmpi eq, %51, %53 : vector<16x16xi32>
    %55 = arith.extui %54 : vector<16x16xi1> to vector<16x16xi32>
    %56 = arith.sitofp %55 : vector<16x16xi32> to vector<16x16xf32>
    %cst_27 = arith.constant dense<0.000000e+00> : vector<16x64xf32>
    %57 = tpu.matmul %56, %39, %cst_27 {dimension_numbers = #tpu.dot_dimension_numbers<[1], [0], [0], [1], [0, 0, 1, 1], [], []>} : vector<16x16xf32>, vector<16x64xf32>, vector<16x64xf32> -> vector<16x64xf32>
    %58 = arith.truncf %57 : vector<16x64xf32> to vector<16x64xbf16>
    %c0_28 = arith.constant 0 : index
    %c0_29 = arith.constant 0 : index
    %c0_30 = arith.constant 0 : index
    %59 = vector.load %arg11[%c0_28, %c0_29, %c0_30] : memref<3x64x64xbf16, #tpu.memory_space<vmem>>, vector<1x64x64xbf16>
    %60 = vector.shape_cast %59 : vector<1x64x64xbf16> to vector<64x64xbf16>
    %cst_31 = arith.constant dense<0.000000e+00> : vector<16x64xf32>
    %61 = tpu.matmul %58, %60, %cst_31 {dimension_numbers = #tpu.dot_dimension_numbers<[1], [0], [0], [1], [0, 0, 1, 1], [], []>} : vector<16x64xbf16>, vector<64x64xbf16>, vector<16x64xf32> -> vector<16x64xf32>
    %62 = arith.truncf %39 : vector<16x64xf32> to vector<16x64xbf16>
    %c1_32 = arith.constant 1 : index
    %c0_33 = arith.constant 0 : index
    %c0_34 = arith.constant 0 : index
    %63 = vector.load %arg11[%c1_32, %c0_33, %c0_34] : memref<3x64x64xbf16, #tpu.memory_space<vmem>>, vector<1x64x64xbf16>
    %64 = vector.shape_cast %63 : vector<1x64x64xbf16> to vector<64x64xbf16>
    %cst_35 = arith.constant dense<0.000000e+00> : vector<16x64xf32>
    %65 = tpu.matmul %62, %64, %cst_35 {dimension_numbers = #tpu.dot_dimension_numbers<[1], [0], [0], [1], [0, 0, 1, 1], [], []>} : vector<16x64xbf16>, vector<64x64xbf16>, vector<16x64xf32> -> vector<16x64xf32>
    %66 = arith.addf %61, %65 : vector<16x64xf32>
    %67 = tpu.iota {dimensions = array<i32: 0>} : vector<16x16xi32>
    %68 = tpu.iota {dimensions = array<i32: 1>} : vector<16x16xi32>
    %c1_i32_36 = arith.constant 1 : i32
    %69 = vector.broadcast %c1_i32_36 : i32 to vector<16x16xi32>
    %70 = arith.addi %67, %69 : vector<16x16xi32>
    %71 = arith.cmpi eq, %68, %70 : vector<16x16xi32>
    %72 = arith.extui %71 : vector<16x16xi1> to vector<16x16xi32>
    %73 = arith.sitofp %72 : vector<16x16xi32> to vector<16x16xf32>
    %cst_37 = arith.constant dense<0.000000e+00> : vector<16x64xf32>
    %74 = tpu.matmul %73, %39, %cst_37 {dimension_numbers = #tpu.dot_dimension_numbers<[1], [0], [0], [1], [0, 0, 1, 1], [], []>} : vector<16x16xf32>, vector<16x64xf32>, vector<16x64xf32> -> vector<16x64xf32>
    %75 = arith.truncf %74 : vector<16x64xf32> to vector<16x64xbf16>
    %c2_38 = arith.constant 2 : index
    %c0_39 = arith.constant 0 : index
    %c0_40 = arith.constant 0 : index
    %76 = vector.load %arg11[%c2_38, %c0_39, %c0_40] : memref<3x64x64xbf16, #tpu.memory_space<vmem>>, vector<1x64x64xbf16>
    %77 = vector.shape_cast %76 : vector<1x64x64xbf16> to vector<64x64xbf16>
    %cst_41 = arith.constant dense<0.000000e+00> : vector<16x64xf32>
    %78 = tpu.matmul %75, %77, %cst_41 {dimension_numbers = #tpu.dot_dimension_numbers<[1], [0], [0], [1], [0, 0, 1, 1], [], []>} : vector<16x64xbf16>, vector<64x64xbf16>, vector<16x64xf32> -> vector<16x64xf32>
    %79 = arith.addf %66, %78 : vector<16x64xf32>
    %c0_42 = arith.constant 0 : index
    %c0_43 = arith.constant 0 : index
    %80 = vector.load %arg8[%c0_42, %c0_43] : memref<1x64xf32, #tpu.memory_space<vmem>>, vector<1x64xf32>
    %81 = vector.broadcast %80 : vector<1x64xf32> to vector<16x64xf32>
    %82 = arith.mulf %79, %81 : vector<16x64xf32>
    %c0_44 = arith.constant 0 : index
    %c0_45 = arith.constant 0 : index
    %83 = vector.load %arg5[%c0_44, %c0_45] : memref<1x64xf32, #tpu.memory_space<vmem>>, vector<1x64xf32>
    %84 = vector.broadcast %83 : vector<1x64xf32> to vector<16x64xf32>
    %85 = arith.addf %82, %84 : vector<16x64xf32>
    %86 = arith.addf %85, %49 : vector<16x64xf32>
    %cst_46 = arith.constant 0.000000e+00 : f32
    %87 = vector.broadcast %cst_46 : f32 to vector<16x64xf32>
    %88 = arith.maximumf %86, %87 : vector<16x64xf32>
    %89 = tpu.iota {dimensions = array<i32: 0>} : vector<8x16xi32>
    %90 = tpu.iota {dimensions = array<i32: 1>} : vector<8x16xi32>
    %c2_i32 = arith.constant 2 : i32
    %91 = vector.broadcast %c2_i32 : i32 to vector<8x16xi32>
    %92 = arith.muli %91, %89 : vector<8x16xi32>
    %93 = arith.cmpi eq, %90, %92 : vector<8x16xi32>
    %94 = arith.extui %93 : vector<8x16xi1> to vector<8x16xi32>
    %95 = arith.sitofp %94 : vector<8x16xi32> to vector<8x16xf32>
    %c2_i32_47 = arith.constant 2 : i32
    %96 = vector.broadcast %c2_i32_47 : i32 to vector<8x16xi32>
    %97 = arith.muli %96, %89 : vector<8x16xi32>
    %c1_i32_48 = arith.constant 1 : i32
    %98 = vector.broadcast %c1_i32_48 : i32 to vector<8x16xi32>
    %99 = arith.addi %97, %98 : vector<8x16xi32>
    %100 = arith.cmpi eq, %90, %99 : vector<8x16xi32>
    %101 = arith.extui %100 : vector<8x16xi1> to vector<8x16xi32>
    %102 = arith.sitofp %101 : vector<8x16xi32> to vector<8x16xf32>
    %cst_49 = arith.constant dense<0.000000e+00> : vector<8x64xf32>
    %103 = tpu.matmul %95, %88, %cst_49 {dimension_numbers = #tpu.dot_dimension_numbers<[1], [0], [0], [1], [0, 0, 1, 1], [], []>} : vector<8x16xf32>, vector<16x64xf32>, vector<8x64xf32> -> vector<8x64xf32>
    %cst_50 = arith.constant dense<0.000000e+00> : vector<8x64xf32>
    %104 = tpu.matmul %102, %88, %cst_50 {dimension_numbers = #tpu.dot_dimension_numbers<[1], [0], [0], [1], [0, 0, 1, 1], [], []>} : vector<8x16xf32>, vector<16x64xf32>, vector<8x64xf32> -> vector<8x64xf32>
    %105 = arith.maximumf %103, %104 : vector<8x64xf32>
    %106 = tpu.iota {dimensions = array<i32: 0>} : vector<8x8xi32>
    %107 = tpu.iota {dimensions = array<i32: 1>} : vector<8x8xi32>
    %c-2_i32 = arith.constant -2 : i32
    %108 = vector.broadcast %c-2_i32 : i32 to vector<8x8xi32>
    %109 = arith.addi %106, %108 : vector<8x8xi32>
    %110 = arith.cmpi eq, %107, %109 : vector<8x8xi32>
    %111 = arith.extui %110 : vector<8x8xi1> to vector<8x8xi32>
    %112 = arith.sitofp %111 : vector<8x8xi32> to vector<8x8xf32>
    %cst_51 = arith.constant dense<0.000000e+00> : vector<8x64xf32>
    %113 = tpu.matmul %112, %105, %cst_51 {dimension_numbers = #tpu.dot_dimension_numbers<[1], [0], [0], [1], [0, 0, 1, 1], [], []>} : vector<8x8xf32>, vector<8x64xf32>, vector<8x64xf32> -> vector<8x64xf32>
    %114 = arith.truncf %113 : vector<8x64xf32> to vector<8x64xbf16>
    %c0_52 = arith.constant 0 : index
    %c0_53 = arith.constant 0 : index
    %c0_54 = arith.constant 0 : index
    %115 = vector.load %arg19[%c0_52, %c0_53, %c0_54] : memref<5x64x128xbf16, #tpu.memory_space<vmem>>, vector<1x64x128xbf16>
    %116 = vector.shape_cast %115 : vector<1x64x128xbf16> to vector<64x128xbf16>
    %cst_55 = arith.constant dense<0.000000e+00> : vector<8x128xf32>
    %117 = tpu.matmul %114, %116, %cst_55 {dimension_numbers = #tpu.dot_dimension_numbers<[1], [0], [0], [1], [0, 0, 1, 1], [], []>} : vector<8x64xbf16>, vector<64x128xbf16>, vector<8x128xf32> -> vector<8x128xf32>
    %118 = tpu.iota {dimensions = array<i32: 0>} : vector<8x8xi32>
    %119 = tpu.iota {dimensions = array<i32: 1>} : vector<8x8xi32>
    %c-1_i32_56 = arith.constant -1 : i32
    %120 = vector.broadcast %c-1_i32_56 : i32 to vector<8x8xi32>
    %121 = arith.addi %118, %120 : vector<8x8xi32>
    %122 = arith.cmpi eq, %119, %121 : vector<8x8xi32>
    %123 = arith.extui %122 : vector<8x8xi1> to vector<8x8xi32>
    %124 = arith.sitofp %123 : vector<8x8xi32> to vector<8x8xf32>
    %cst_57 = arith.constant dense<0.000000e+00> : vector<8x64xf32>
    %125 = tpu.matmul %124, %105, %cst_57 {dimension_numbers = #tpu.dot_dimension_numbers<[1], [0], [0], [1], [0, 0, 1, 1], [], []>} : vector<8x8xf32>, vector<8x64xf32>, vector<8x64xf32> -> vector<8x64xf32>
    %126 = arith.truncf %125 : vector<8x64xf32> to vector<8x64xbf16>
    %c1_58 = arith.constant 1 : index
    %c0_59 = arith.constant 0 : index
    %c0_60 = arith.constant 0 : index
    %127 = vector.load %arg19[%c1_58, %c0_59, %c0_60] : memref<5x64x128xbf16, #tpu.memory_space<vmem>>, vector<1x64x128xbf16>
    %128 = vector.shape_cast %127 : vector<1x64x128xbf16> to vector<64x128xbf16>
    %cst_61 = arith.constant dense<0.000000e+00> : vector<8x128xf32>
    %129 = tpu.matmul %126, %128, %cst_61 {dimension_numbers = #tpu.dot_dimension_numbers<[1], [0], [0], [1], [0, 0, 1, 1], [], []>} : vector<8x64xbf16>, vector<64x128xbf16>, vector<8x128xf32> -> vector<8x128xf32>
    %130 = arith.addf %117, %129 : vector<8x128xf32>
    %131 = arith.truncf %105 : vector<8x64xf32> to vector<8x64xbf16>
    %c2_62 = arith.constant 2 : index
    %c0_63 = arith.constant 0 : index
    %c0_64 = arith.constant 0 : index
    %132 = vector.load %arg19[%c2_62, %c0_63, %c0_64] : memref<5x64x128xbf16, #tpu.memory_space<vmem>>, vector<1x64x128xbf16>
    %133 = vector.shape_cast %132 : vector<1x64x128xbf16> to vector<64x128xbf16>
    %cst_65 = arith.constant dense<0.000000e+00> : vector<8x128xf32>
    %134 = tpu.matmul %131, %133, %cst_65 {dimension_numbers = #tpu.dot_dimension_numbers<[1], [0], [0], [1], [0, 0, 1, 1], [], []>} : vector<8x64xbf16>, vector<64x128xbf16>, vector<8x128xf32> -> vector<8x128xf32>
    %135 = arith.addf %130, %134 : vector<8x128xf32>
    %136 = tpu.iota {dimensions = array<i32: 0>} : vector<8x8xi32>
    %137 = tpu.iota {dimensions = array<i32: 1>} : vector<8x8xi32>
    %c1_i32_66 = arith.constant 1 : i32
    %138 = vector.broadcast %c1_i32_66 : i32 to vector<8x8xi32>
    %139 = arith.addi %136, %138 : vector<8x8xi32>
    %140 = arith.cmpi eq, %137, %139 : vector<8x8xi32>
    %141 = arith.extui %140 : vector<8x8xi1> to vector<8x8xi32>
    %142 = arith.sitofp %141 : vector<8x8xi32> to vector<8x8xf32>
    %cst_67 = arith.constant dense<0.000000e+00> : vector<8x64xf32>
    %143 = tpu.matmul %142, %105, %cst_67 {dimension_numbers = #tpu.dot_dimension_numbers<[1], [0], [0], [1], [0, 0, 1, 1], [], []>} : vector<8x8xf32>, vector<8x64xf32>, vector<8x64xf32> -> vector<8x64xf32>
    %144 = arith.truncf %143 : vector<8x64xf32> to vector<8x64xbf16>
    %c3 = arith.constant 3 : index
    %c0_68 = arith.constant 0 : index
    %c0_69 = arith.constant 0 : index
    %145 = vector.load %arg19[%c3, %c0_68, %c0_69] : memref<5x64x128xbf16, #tpu.memory_space<vmem>>, vector<1x64x128xbf16>
    %146 = vector.shape_cast %145 : vector<1x64x128xbf16> to vector<64x128xbf16>
    %cst_70 = arith.constant dense<0.000000e+00> : vector<8x128xf32>
    %147 = tpu.matmul %144, %146, %cst_70 {dimension_numbers = #tpu.dot_dimension_numbers<[1], [0], [0], [1], [0, 0, 1, 1], [], []>} : vector<8x64xbf16>, vector<64x128xbf16>, vector<8x128xf32> -> vector<8x128xf32>
    %148 = arith.addf %135, %147 : vector<8x128xf32>
    %149 = tpu.iota {dimensions = array<i32: 0>} : vector<8x8xi32>
    %150 = tpu.iota {dimensions = array<i32: 1>} : vector<8x8xi32>
    %c2_i32_71 = arith.constant 2 : i32
    %151 = vector.broadcast %c2_i32_71 : i32 to vector<8x8xi32>
    %152 = arith.addi %149, %151 : vector<8x8xi32>
    %153 = arith.cmpi eq, %150, %152 : vector<8x8xi32>
    %154 = arith.extui %153 : vector<8x8xi1> to vector<8x8xi32>
    %155 = arith.sitofp %154 : vector<8x8xi32> to vector<8x8xf32>
    %cst_72 = arith.constant dense<0.000000e+00> : vector<8x64xf32>
    %156 = tpu.matmul %155, %105, %cst_72 {dimension_numbers = #tpu.dot_dimension_numbers<[1], [0], [0], [1], [0, 0, 1, 1], [], []>} : vector<8x8xf32>, vector<8x64xf32>, vector<8x64xf32> -> vector<8x64xf32>
    %157 = arith.truncf %156 : vector<8x64xf32> to vector<8x64xbf16>
    %c4 = arith.constant 4 : index
    %c0_73 = arith.constant 0 : index
    %c0_74 = arith.constant 0 : index
    %158 = vector.load %arg19[%c4, %c0_73, %c0_74] : memref<5x64x128xbf16, #tpu.memory_space<vmem>>, vector<1x64x128xbf16>
    %159 = vector.shape_cast %158 : vector<1x64x128xbf16> to vector<64x128xbf16>
    %cst_75 = arith.constant dense<0.000000e+00> : vector<8x128xf32>
    %160 = tpu.matmul %157, %159, %cst_75 {dimension_numbers = #tpu.dot_dimension_numbers<[1], [0], [0], [1], [0, 0, 1, 1], [], []>} : vector<8x64xbf16>, vector<64x128xbf16>, vector<8x128xf32> -> vector<8x128xf32>
    %161 = arith.addf %148, %160 : vector<8x128xf32>
    %c0_76 = arith.constant 0 : index
    %c0_77 = arith.constant 0 : index
    %162 = vector.load %arg16[%c0_76, %c0_77] : memref<1x128xf32, #tpu.memory_space<vmem>>, vector<1x128xf32>
    %163 = vector.broadcast %162 : vector<1x128xf32> to vector<8x128xf32>
    %164 = arith.mulf %161, %163 : vector<8x128xf32>
    %c0_78 = arith.constant 0 : index
    %c0_79 = arith.constant 0 : index
    %165 = vector.load %arg13[%c0_78, %c0_79] : memref<1x128xf32, #tpu.memory_space<vmem>>, vector<1x128xf32>
    %166 = vector.broadcast %165 : vector<1x128xf32> to vector<8x128xf32>
    %167 = arith.addf %164, %166 : vector<8x128xf32>
    %cst_80 = arith.constant 0.000000e+00 : f32
    %168 = vector.broadcast %cst_80 : f32 to vector<8x128xf32>
    %169 = arith.maximumf %167, %168 : vector<8x128xf32>
    %170 = arith.truncf %105 : vector<8x64xf32> to vector<8x64xbf16>
    %c0_81 = arith.constant 0 : index
    %c0_82 = arith.constant 0 : index
    %c0_83 = arith.constant 0 : index
    %171 = vector.load %arg21[%c0_81, %c0_82, %c0_83] : memref<1x64x128xbf16, #tpu.memory_space<vmem>>, vector<1x64x128xbf16>
    %172 = vector.shape_cast %171 : vector<1x64x128xbf16> to vector<64x128xbf16>
    %cst_84 = arith.constant dense<0.000000e+00> : vector<8x128xf32>
    %173 = tpu.matmul %170, %172, %cst_84 {dimension_numbers = #tpu.dot_dimension_numbers<[1], [0], [0], [1], [0, 0, 1, 1], [], []>} : vector<8x64xbf16>, vector<64x128xbf16>, vector<8x128xf32> -> vector<8x128xf32>
    %c0_85 = arith.constant 0 : index
    %c0_86 = arith.constant 0 : index
    %174 = vector.load %arg18[%c0_85, %c0_86] : memref<1x128xf32, #tpu.memory_space<vmem>>, vector<1x128xf32>
    %175 = vector.broadcast %174 : vector<1x128xf32> to vector<8x128xf32>
    %176 = arith.mulf %173, %175 : vector<8x128xf32>
    %c0_87 = arith.constant 0 : index
    %c0_88 = arith.constant 0 : index
    %177 = vector.load %arg15[%c0_87, %c0_88] : memref<1x128xf32, #tpu.memory_space<vmem>>, vector<1x128xf32>
    %178 = vector.broadcast %177 : vector<1x128xf32> to vector<8x128xf32>
    %179 = arith.addf %176, %178 : vector<8x128xf32>
    %180 = tpu.iota {dimensions = array<i32: 0>} : vector<8x8xi32>
    %181 = tpu.iota {dimensions = array<i32: 1>} : vector<8x8xi32>
    %c-2_i32_89 = arith.constant -2 : i32
    %182 = vector.broadcast %c-2_i32_89 : i32 to vector<8x8xi32>
    %183 = arith.addi %180, %182 : vector<8x8xi32>
    %184 = arith.cmpi eq, %181, %183 : vector<8x8xi32>
    %185 = arith.extui %184 : vector<8x8xi1> to vector<8x8xi32>
    %186 = arith.sitofp %185 : vector<8x8xi32> to vector<8x8xf32>
    %cst_90 = arith.constant dense<0.000000e+00> : vector<8x128xf32>
    %187 = tpu.matmul %186, %169, %cst_90 {dimension_numbers = #tpu.dot_dimension_numbers<[1], [0], [0], [1], [0, 0, 1, 1], [], []>} : vector<8x8xf32>, vector<8x128xf32>, vector<8x128xf32> -> vector<8x128xf32>
    %188 = tpu.iota {dimensions = array<i32: 0>} : vector<8x8xi32>
    %189 = tpu.iota {dimensions = array<i32: 1>} : vector<8x8xi32>
    %c-1_i32_91 = arith.constant -1 : i32
    %190 = vector.broadcast %c-1_i32_91 : i32 to vector<8x8xi32>
    %191 = arith.addi %188, %190 : vector<8x8xi32>
    %192 = arith.cmpi eq, %189, %191 : vector<8x8xi32>
    %193 = arith.extui %192 : vector<8x8xi1> to vector<8x8xi32>
    %194 = arith.sitofp %193 : vector<8x8xi32> to vector<8x8xf32>
    %cst_92 = arith.constant dense<0.000000e+00> : vector<8x128xf32>
    %195 = tpu.matmul %194, %169, %cst_92 {dimension_numbers = #tpu.dot_dimension_numbers<[1], [0], [0], [1], [0, 0, 1, 1], [], []>} : vector<8x8xf32>, vector<8x128xf32>, vector<8x128xf32> -> vector<8x128xf32>
    %196 = tpu.iota {dimensions = array<i32: 0>} : vector<8x8xi32>
    %197 = tpu.iota {dimensions = array<i32: 1>} : vector<8x8xi32>
    %c1_i32_93 = arith.constant 1 : i32
    %198 = vector.broadcast %c1_i32_93 : i32 to vector<8x8xi32>
    %199 = arith.addi %196, %198 : vector<8x8xi32>
    %200 = arith.cmpi eq, %197, %199 : vector<8x8xi32>
    %201 = arith.extui %200 : vector<8x8xi1> to vector<8x8xi32>
    %202 = arith.sitofp %201 : vector<8x8xi32> to vector<8x8xf32>
    %cst_94 = arith.constant dense<0.000000e+00> : vector<8x128xf32>
    %203 = tpu.matmul %202, %169, %cst_94 {dimension_numbers = #tpu.dot_dimension_numbers<[1], [0], [0], [1], [0, 0, 1, 1], [], []>} : vector<8x8xf32>, vector<8x128xf32>, vector<8x128xf32> -> vector<8x128xf32>
    %204 = tpu.iota {dimensions = array<i32: 0>} : vector<8x8xi32>
    %205 = tpu.iota {dimensions = array<i32: 1>} : vector<8x8xi32>
    %c2_i32_95 = arith.constant 2 : i32
    %206 = vector.broadcast %c2_i32_95 : i32 to vector<8x8xi32>
    %207 = arith.addi %204, %206 : vector<8x8xi32>
    %208 = arith.cmpi eq, %205, %207 : vector<8x8xi32>
    %209 = arith.extui %208 : vector<8x8xi1> to vector<8x8xi32>
    %210 = arith.sitofp %209 : vector<8x8xi32> to vector<8x8xf32>
    %cst_96 = arith.constant dense<0.000000e+00> : vector<8x128xf32>
    %211 = tpu.matmul %210, %169, %cst_96 {dimension_numbers = #tpu.dot_dimension_numbers<[1], [0], [0], [1], [0, 0, 1, 1], [], []>} : vector<8x8xf32>, vector<8x128xf32>, vector<8x128xf32> -> vector<8x128xf32>
    %212 = tpu.concatenate %187, %195, %169, %203, %211 in 1 : vector<8x128xf32>, vector<8x128xf32>, vector<8x128xf32>, vector<8x128xf32>, vector<8x128xf32> -> vector<8x640xf32>
    %213 = arith.truncf %212 : vector<8x640xf32> to vector<8x640xbf16>
    %c0_97 = arith.constant 0 : index
    %c0_98 = arith.constant 0 : index
    %214 = vector.load %arg20[%c0_97, %c0_98] : memref<640x128xbf16, #tpu.memory_space<vmem>>, vector<640x128xbf16>
    %cst_99 = arith.constant dense<0.000000e+00> : vector<8x128xf32>
    %215 = tpu.matmul %213, %214, %cst_99 {dimension_numbers = #tpu.dot_dimension_numbers<[1], [0], [0], [1], [0, 0, 1, 1], [], []>} : vector<8x640xbf16>, vector<640x128xbf16>, vector<8x128xf32> -> vector<8x128xf32>
    %c0_100 = arith.constant 0 : index
    %c0_101 = arith.constant 0 : index
    %216 = vector.load %arg17[%c0_100, %c0_101] : memref<1x128xf32, #tpu.memory_space<vmem>>, vector<1x128xf32>
    %217 = vector.broadcast %216 : vector<1x128xf32> to vector<8x128xf32>
    %218 = arith.mulf %215, %217 : vector<8x128xf32>
    %c0_102 = arith.constant 0 : index
    %c0_103 = arith.constant 0 : index
    %219 = vector.load %arg14[%c0_102, %c0_103] : memref<1x128xf32, #tpu.memory_space<vmem>>, vector<1x128xf32>
    %220 = vector.broadcast %219 : vector<1x128xf32> to vector<8x128xf32>
    %221 = arith.addf %218, %220 : vector<8x128xf32>
    %222 = arith.addf %221, %179 : vector<8x128xf32>
    %cst_104 = arith.constant 0.000000e+00 : f32
    %223 = vector.broadcast %cst_104 : f32 to vector<8x128xf32>
    %224 = arith.maximumf %222, %223 : vector<8x128xf32>
    %225 = tpu.iota {dimensions = array<i32: 0>} : vector<4x8xi32>
    %226 = tpu.iota {dimensions = array<i32: 1>} : vector<4x8xi32>
    %c2_i32_105 = arith.constant 2 : i32
    %227 = vector.broadcast %c2_i32_105 : i32 to vector<4x8xi32>
    %228 = arith.muli %227, %225 : vector<4x8xi32>
    %229 = arith.cmpi eq, %226, %228 : vector<4x8xi32>
    %230 = arith.extui %229 : vector<4x8xi1> to vector<4x8xi32>
    %231 = arith.sitofp %230 : vector<4x8xi32> to vector<4x8xf32>
    %c2_i32_106 = arith.constant 2 : i32
    %232 = vector.broadcast %c2_i32_106 : i32 to vector<4x8xi32>
    %233 = arith.muli %232, %225 : vector<4x8xi32>
    %c1_i32_107 = arith.constant 1 : i32
    %234 = vector.broadcast %c1_i32_107 : i32 to vector<4x8xi32>
    %235 = arith.addi %233, %234 : vector<4x8xi32>
    %236 = arith.cmpi eq, %226, %235 : vector<4x8xi32>
    %237 = arith.extui %236 : vector<4x8xi1> to vector<4x8xi32>
    %238 = arith.sitofp %237 : vector<4x8xi32> to vector<4x8xf32>
    %cst_108 = arith.constant dense<0.000000e+00> : vector<4x128xf32>
    %239 = tpu.matmul %231, %224, %cst_108 {dimension_numbers = #tpu.dot_dimension_numbers<[1], [0], [0], [1], [0, 0, 1, 1], [], []>} : vector<4x8xf32>, vector<8x128xf32>, vector<4x128xf32> -> vector<4x128xf32>
    %cst_109 = arith.constant dense<0.000000e+00> : vector<4x128xf32>
    %240 = tpu.matmul %238, %224, %cst_109 {dimension_numbers = #tpu.dot_dimension_numbers<[1], [0], [0], [1], [0, 0, 1, 1], [], []>} : vector<4x8xf32>, vector<8x128xf32>, vector<4x128xf32> -> vector<4x128xf32>
    %241 = arith.maximumf %239, %240 : vector<4x128xf32>
    %242 = tpu.iota {dimensions = array<i32: 0>} : vector<4x4xi32>
    %243 = tpu.iota {dimensions = array<i32: 1>} : vector<4x4xi32>
    %c-1_i32_110 = arith.constant -1 : i32
    %244 = vector.broadcast %c-1_i32_110 : i32 to vector<4x4xi32>
    %245 = arith.addi %242, %244 : vector<4x4xi32>
    %246 = arith.cmpi eq, %243, %245 : vector<4x4xi32>
    %247 = arith.extui %246 : vector<4x4xi1> to vector<4x4xi32>
    %248 = arith.sitofp %247 : vector<4x4xi32> to vector<4x4xf32>
    %cst_111 = arith.constant dense<0.000000e+00> : vector<4x128xf32>
    %249 = tpu.matmul %248, %241, %cst_111 {dimension_numbers = #tpu.dot_dimension_numbers<[1], [0], [0], [1], [0, 0, 1, 1], [], []>} : vector<4x4xf32>, vector<4x128xf32>, vector<4x128xf32> -> vector<4x128xf32>
    %250 = tpu.iota {dimensions = array<i32: 0>} : vector<4x4xi32>
    %251 = tpu.iota {dimensions = array<i32: 1>} : vector<4x4xi32>
    %c1_i32_112 = arith.constant 1 : i32
    %252 = vector.broadcast %c1_i32_112 : i32 to vector<4x4xi32>
    %253 = arith.addi %250, %252 : vector<4x4xi32>
    %254 = arith.cmpi eq, %251, %253 : vector<4x4xi32>
    %255 = arith.extui %254 : vector<4x4xi1> to vector<4x4xi32>
    %256 = arith.sitofp %255 : vector<4x4xi32> to vector<4x4xf32>
    %cst_113 = arith.constant dense<0.000000e+00> : vector<4x128xf32>
    %257 = tpu.matmul %256, %241, %cst_113 {dimension_numbers = #tpu.dot_dimension_numbers<[1], [0], [0], [1], [0, 0, 1, 1], [], []>} : vector<4x4xf32>, vector<4x128xf32>, vector<4x128xf32> -> vector<4x128xf32>
    %258 = tpu.concatenate %249, %241, %257 in 1 : vector<4x128xf32>, vector<4x128xf32>, vector<4x128xf32> -> vector<4x384xf32>
    %259 = arith.truncf %258 : vector<4x384xf32> to vector<4x384xbf16>
    %c0_114 = arith.constant 0 : index
    %c0_115 = arith.constant 0 : index
    %260 = vector.load %arg26[%c0_114, %c0_115] : memref<384x128xbf16, #tpu.memory_space<vmem>>, vector<384x128xbf16>
    %cst_116 = arith.constant dense<0.000000e+00> : vector<4x128xf32>
    %261 = tpu.matmul %259, %260, %cst_116 {dimension_numbers = #tpu.dot_dimension_numbers<[1], [0], [0], [1], [0, 0, 1, 1], [], []>} : vector<4x384xbf16>, vector<384x128xbf16>, vector<4x128xf32> -> vector<4x128xf32>
    %c0_117 = arith.constant 0 : index
    %c0_118 = arith.constant 0 : index
    %262 = vector.load %arg24[%c0_117, %c0_118] : memref<1x128xf32, #tpu.memory_space<vmem>>, vector<1x128xf32>
    %263 = vector.broadcast %262 : vector<1x128xf32> to vector<4x128xf32>
    %264 = arith.mulf %261, %263 : vector<4x128xf32>
    %c0_119 = arith.constant 0 : index
    %c0_120 = arith.constant 0 : index
    %265 = vector.load %arg22[%c0_119, %c0_120] : memref<1x128xf32, #tpu.memory_space<vmem>>, vector<1x128xf32>
    %266 = vector.broadcast %265 : vector<1x128xf32> to vector<4x128xf32>
    %267 = arith.addf %264, %266 : vector<4x128xf32>
    %cst_121 = arith.constant 0.000000e+00 : f32
    %268 = vector.broadcast %cst_121 : f32 to vector<4x128xf32>
    %269 = arith.maximumf %267, %268 : vector<4x128xf32>
    %270 = tpu.iota {dimensions = array<i32: 0>} : vector<4x4xi32>
    %271 = tpu.iota {dimensions = array<i32: 1>} : vector<4x4xi32>
    %c-1_i32_122 = arith.constant -1 : i32
    %272 = vector.broadcast %c-1_i32_122 : i32 to vector<4x4xi32>
    %273 = arith.addi %270, %272 : vector<4x4xi32>
    %274 = arith.cmpi eq, %271, %273 : vector<4x4xi32>
    %275 = arith.extui %274 : vector<4x4xi1> to vector<4x4xi32>
    %276 = arith.sitofp %275 : vector<4x4xi32> to vector<4x4xf32>
    %cst_123 = arith.constant dense<0.000000e+00> : vector<4x128xf32>
    %277 = tpu.matmul %276, %269, %cst_123 {dimension_numbers = #tpu.dot_dimension_numbers<[1], [0], [0], [1], [0, 0, 1, 1], [], []>} : vector<4x4xf32>, vector<4x128xf32>, vector<4x128xf32> -> vector<4x128xf32>
    %278 = tpu.iota {dimensions = array<i32: 0>} : vector<4x4xi32>
    %279 = tpu.iota {dimensions = array<i32: 1>} : vector<4x4xi32>
    %c1_i32_124 = arith.constant 1 : i32
    %280 = vector.broadcast %c1_i32_124 : i32 to vector<4x4xi32>
    %281 = arith.addi %278, %280 : vector<4x4xi32>
    %282 = arith.cmpi eq, %279, %281 : vector<4x4xi32>
    %283 = arith.extui %282 : vector<4x4xi1> to vector<4x4xi32>
    %284 = arith.sitofp %283 : vector<4x4xi32> to vector<4x4xf32>
    %cst_125 = arith.constant dense<0.000000e+00> : vector<4x128xf32>
    %285 = tpu.matmul %284, %269, %cst_125 {dimension_numbers = #tpu.dot_dimension_numbers<[1], [0], [0], [1], [0, 0, 1, 1], [], []>} : vector<4x4xf32>, vector<4x128xf32>, vector<4x128xf32> -> vector<4x128xf32>
    %286 = tpu.concatenate %277, %269, %285 in 1 : vector<4x128xf32>, vector<4x128xf32>, vector<4x128xf32> -> vector<4x384xf32>
    %287 = arith.truncf %286 : vector<4x384xf32> to vector<4x384xbf16>
    %c0_126 = arith.constant 0 : index
    %c0_127 = arith.constant 0 : index
    %288 = vector.load %arg27[%c0_126, %c0_127] : memref<384x128xbf16, #tpu.memory_space<vmem>>, vector<384x128xbf16>
    %cst_128 = arith.constant dense<0.000000e+00> : vector<4x128xf32>
    %289 = tpu.matmul %287, %288, %cst_128 {dimension_numbers = #tpu.dot_dimension_numbers<[1], [0], [0], [1], [0, 0, 1, 1], [], []>} : vector<4x384xbf16>, vector<384x128xbf16>, vector<4x128xf32> -> vector<4x128xf32>
    %c0_129 = arith.constant 0 : index
    %c0_130 = arith.constant 0 : index
    %290 = vector.load %arg25[%c0_129, %c0_130] : memref<1x128xf32, #tpu.memory_space<vmem>>, vector<1x128xf32>
    %291 = vector.broadcast %290 : vector<1x128xf32> to vector<4x128xf32>
    %292 = arith.mulf %289, %291 : vector<4x128xf32>
    %c0_131 = arith.constant 0 : index
    %c0_132 = arith.constant 0 : index
    %293 = vector.load %arg23[%c0_131, %c0_132] : memref<1x128xf32, #tpu.memory_space<vmem>>, vector<1x128xf32>
    %294 = vector.broadcast %293 : vector<1x128xf32> to vector<4x128xf32>
    %295 = arith.addf %292, %294 : vector<4x128xf32>
    %296 = arith.addf %295, %241 : vector<4x128xf32>
    %cst_133 = arith.constant 0.000000e+00 : f32
    %297 = vector.broadcast %cst_133 : f32 to vector<4x128xf32>
    %298 = arith.maximumf %296, %297 : vector<4x128xf32>
    %299 = vector.extract_strided_slice %298 {offsets = [0, 0], sizes = [4, 64], strides = [1, 1]} : vector<4x128xf32> to vector<4x64xf32>
    %300 = vector.extract_strided_slice %298 {offsets = [0, 64], sizes = [4, 64], strides = [1, 1]} : vector<4x128xf32> to vector<4x64xf32>
    %cst_134 = arith.constant dense<0xFF800000> : vector<4xf32>
    %301 = vector.multi_reduction <maximumf>, %299, %cst_134 [1] : vector<4x64xf32> to vector<4xf32>
    %302 = vector.shape_cast %301 : vector<4xf32> to vector<4x1xf32>
    %303 = vector.broadcast %302 : vector<4x1xf32> to vector<4x64xf32>
    %304 = arith.subf %299, %303 : vector<4x64xf32>
    %305 = math.exp %304 : vector<4x64xf32>
    %cst_135 = arith.constant dense<0.000000e+00> : vector<4xf32>
    %306 = vector.multi_reduction <add>, %305, %cst_135 [1] : vector<4x64xf32> to vector<4xf32>
    %307 = vector.shape_cast %306 : vector<4xf32> to vector<4x1xf32>
    %308 = vector.broadcast %307 : vector<4x1xf32> to vector<4x64xf32>
    %309 = arith.divf %305, %308 : vector<4x64xf32>
    %310 = arith.mulf %300, %309 : vector<4x64xf32>
    %cst_136 = arith.constant dense<0.000000e+00> : vector<64xf32>
    %311 = vector.multi_reduction <add>, %310, %cst_136 [0] : vector<4x64xf32> to vector<64xf32>
    %312 = vector.shape_cast %311 : vector<64xf32> to vector<1x64xf32>
    %c0_137 = arith.constant 0 : index
    %c0_138 = arith.constant 0 : index
    %313 = vector.load %arg3[%c0_137, %c0_138] : memref<64x6xf32, #tpu.memory_space<vmem>>, vector<64x6xf32>
    %cst_139 = arith.constant dense<0.000000e+00> : vector<1x6xf32>
    %314 = tpu.matmul %312, %313, %cst_139 {dimension_numbers = #tpu.dot_dimension_numbers<[1], [0], [0], [1], [0, 0, 1, 1], [], []>} : vector<1x64xf32>, vector<64x6xf32>, vector<1x6xf32> -> vector<1x6xf32>
    %c0_140 = arith.constant 0 : index
    %c0_141 = arith.constant 0 : index
    %315 = vector.load %arg2[%c0_140, %c0_141] : memref<1x6xf32, #tpu.memory_space<vmem>>, vector<1x6xf32>
    %316 = arith.addf %314, %315 : vector<1x6xf32>
    %c0_142 = arith.constant 0 : index
    %c0_143 = arith.constant 0 : index
    %c0_144 = arith.constant 0 : index
    %317 = vector.load %arg28[%c0_142, %c0_143, %c0_144] : memref<1x1x6xf32, #tpu.memory_space<vmem>>, vector<1x1x6xf32>
    %318 = vector.shape_cast %317 : vector<1x1x6xf32> to vector<1x6xf32>
    %319 = vector.shape_cast %316 : vector<1x6xf32> to vector<1x1x6xf32>
    tpu.vector_store %arg28[%c0_142, %c0_143, %c0_144], %319 {strides = array<i32>} : memref<1x1x6xf32, #tpu.memory_space<vmem>>, vector<1x1x6xf32>,
    return
  }
  func.func @transform_0(%arg0: i32) -> (i32, i32, i32) {
    %c0_i32 = arith.constant 0 : i32
    %c0_i32_0 = arith.constant 0 : i32
    %c0_i32_1 = arith.constant 0 : i32
    return %arg0, %c0_i32, %c0_i32_0 : i32, i32, i32
  }
  func.func @transform_1(%arg0: i32) -> (i32, i32) {
    %c0_i32 = arith.constant 0 : i32
    %c0_i32_0 = arith.constant 0 : i32
    %c0_i32_1 = arith.constant 0 : i32
    return %c0_i32, %c0_i32_0 : i32, i32
  }
  func.func @transform_2(%arg0: i32) -> (i32, i32) {
    %c0_i32 = arith.constant 0 : i32
    %c0_i32_0 = arith.constant 0 : i32
    %c0_i32_1 = arith.constant 0 : i32
    return %c0_i32, %c0_i32_0 : i32, i32
  }
  func.func @transform_3(%arg0: i32) -> (i32, i32) {
    %c0_i32 = arith.constant 0 : i32
    %c0_i32_0 = arith.constant 0 : i32
    %c0_i32_1 = arith.constant 0 : i32
    return %c0_i32, %c0_i32_0 : i32, i32
  }
  func.func @transform_4(%arg0: i32) -> (i32, i32) {
    %c0_i32 = arith.constant 0 : i32
    %c0_i32_0 = arith.constant 0 : i32
    %c0_i32_1 = arith.constant 0 : i32
    return %c0_i32, %c0_i32_0 : i32, i32
  }
  func.func @transform_5(%arg0: i32) -> (i32, i32) {
    %c0_i32 = arith.constant 0 : i32
    %c0_i32_0 = arith.constant 0 : i32
    %c0_i32_1 = arith.constant 0 : i32
    return %c0_i32, %c0_i32_0 : i32, i32
  }
  func.func @transform_6(%arg0: i32) -> (i32, i32) {
    %c0_i32 = arith.constant 0 : i32
    %c0_i32_0 = arith.constant 0 : i32
    %c0_i32_1 = arith.constant 0 : i32
    return %c0_i32, %c0_i32_0 : i32, i32
  }
  func.func @transform_7(%arg0: i32) -> (i32, i32) {
    %c0_i32 = arith.constant 0 : i32
    %c0_i32_0 = arith.constant 0 : i32
    %c0_i32_1 = arith.constant 0 : i32
    return %c0_i32, %c0_i32_0 : i32, i32
  }
  func.func @transform_8(%arg0: i32) -> (i32, i32) {
    %c0_i32 = arith.constant 0 : i32
    %c0_i32_0 = arith.constant 0 : i32
    %c0_i32_1 = arith.constant 0 : i32
    return %c0_i32, %c0_i32_0 : i32, i32
  }
  func.func @transform_9(%arg0: i32) -> (i32, i32, i32) {
    %c0_i32 = arith.constant 0 : i32
    %c0_i32_0 = arith.constant 0 : i32
    %c0_i32_1 = arith.constant 0 : i32
    %c0_i32_2 = arith.constant 0 : i32
    return %c0_i32, %c0_i32_0, %c0_i32_1 : i32, i32, i32
  }
  func.func @transform_10(%arg0: i32) -> (i32, i32, i32) {
    %c0_i32 = arith.constant 0 : i32
    %c0_i32_0 = arith.constant 0 : i32
    %c0_i32_1 = arith.constant 0 : i32
    %c0_i32_2 = arith.constant 0 : i32
    return %c0_i32, %c0_i32_0, %c0_i32_1 : i32, i32, i32
  }
  func.func @transform_11(%arg0: i32) -> (i32, i32, i32) {
    %c0_i32 = arith.constant 0 : i32
    %c0_i32_0 = arith.constant 0 : i32
    %c0_i32_1 = arith.constant 0 : i32
    %c0_i32_2 = arith.constant 0 : i32
    return %c0_i32, %c0_i32_0, %c0_i32_1 : i32, i32, i32
  }
  func.func @transform_12(%arg0: i32) -> (i32, i32) {
    %c0_i32 = arith.constant 0 : i32
    %c0_i32_0 = arith.constant 0 : i32
    %c0_i32_1 = arith.constant 0 : i32
    return %c0_i32, %c0_i32_0 : i32, i32
  }
  func.func @transform_13(%arg0: i32) -> (i32, i32) {
    %c0_i32 = arith.constant 0 : i32
    %c0_i32_0 = arith.constant 0 : i32
    %c0_i32_1 = arith.constant 0 : i32
    return %c0_i32, %c0_i32_0 : i32, i32
  }
  func.func @transform_14(%arg0: i32) -> (i32, i32) {
    %c0_i32 = arith.constant 0 : i32
    %c0_i32_0 = arith.constant 0 : i32
    %c0_i32_1 = arith.constant 0 : i32
    return %c0_i32, %c0_i32_0 : i32, i32
  }
  func.func @transform_15(%arg0: i32) -> (i32, i32) {
    %c0_i32 = arith.constant 0 : i32
    %c0_i32_0 = arith.constant 0 : i32
    %c0_i32_1 = arith.constant 0 : i32
    return %c0_i32, %c0_i32_0 : i32, i32
  }
  func.func @transform_16(%arg0: i32) -> (i32, i32) {
    %c0_i32 = arith.constant 0 : i32
    %c0_i32_0 = arith.constant 0 : i32
    %c0_i32_1 = arith.constant 0 : i32
    return %c0_i32, %c0_i32_0 : i32, i32
  }
  func.func @transform_17(%arg0: i32) -> (i32, i32) {
    %c0_i32 = arith.constant 0 : i32
    %c0_i32_0 = arith.constant 0 : i32
    %c0_i32_1 = arith.constant 0 : i32
    return %c0_i32, %c0_i32_0 : i32, i32
  }
  func.func @transform_18(%arg0: i32) -> (i32, i32, i32) {
    %c0_i32 = arith.constant 0 : i32
    %c0_i32_0 = arith.constant 0 : i32
    %c0_i32_1 = arith.constant 0 : i32
    %c0_i32_2 = arith.constant 0 : i32
    return %c0_i32, %c0_i32_0, %c0_i32_1 : i32, i32, i32
  }
  func.func @transform_19(%arg0: i32) -> (i32, i32) {
    %c0_i32 = arith.constant 0 : i32
    %c0_i32_0 = arith.constant 0 : i32
    %c0_i32_1 = arith.constant 0 : i32
    return %c0_i32, %c0_i32_0 : i32, i32
  }
  func.func @transform_20(%arg0: i32) -> (i32, i32, i32) {
    %c0_i32 = arith.constant 0 : i32
    %c0_i32_0 = arith.constant 0 : i32
    %c0_i32_1 = arith.constant 0 : i32
    %c0_i32_2 = arith.constant 0 : i32
    return %c0_i32, %c0_i32_0, %c0_i32_1 : i32, i32, i32
  }
  func.func @transform_21(%arg0: i32) -> (i32, i32) {
    %c0_i32 = arith.constant 0 : i32
    %c0_i32_0 = arith.constant 0 : i32
    %c0_i32_1 = arith.constant 0 : i32
    return %c0_i32, %c0_i32_0 : i32, i32
  }
  func.func @transform_22(%arg0: i32) -> (i32, i32) {
    %c0_i32 = arith.constant 0 : i32
    %c0_i32_0 = arith.constant 0 : i32
    %c0_i32_1 = arith.constant 0 : i32
    return %c0_i32, %c0_i32_0 : i32, i32
  }
  func.func @transform_23(%arg0: i32) -> (i32, i32) {
    %c0_i32 = arith.constant 0 : i32
    %c0_i32_0 = arith.constant 0 : i32
    %c0_i32_1 = arith.constant 0 : i32
    return %c0_i32, %c0_i32_0 : i32, i32
  }
  func.func @transform_24(%arg0: i32) -> (i32, i32) {
    %c0_i32 = arith.constant 0 : i32
    %c0_i32_0 = arith.constant 0 : i32
    %c0_i32_1 = arith.constant 0 : i32
    return %c0_i32, %c0_i32_0 : i32, i32
  }
  func.func @transform_25(%arg0: i32) -> (i32, i32) {
    %c0_i32 = arith.constant 0 : i32
    %c0_i32_0 = arith.constant 0 : i32
    %c0_i32_1 = arith.constant 0 : i32
    return %c0_i32, %c0_i32_0 : i32, i32
  }
  func.func @transform_26(%arg0: i32) -> (i32, i32) {
    %c0_i32 = arith.constant 0 : i32
    %c0_i32_0 = arith.constant 0 : i32
    %c0_i32_1 = arith.constant 0 : i32
    return %c0_i32, %c0_i32_0 : i32, i32
  }
  func.func @transform_27(%arg0: i32) -> (i32, i32, i32) {
    %c0_i32 = arith.constant 0 : i32
    %c0_i32_0 = arith.constant 0 : i32
    %c0_i32_1 = arith.constant 0 : i32
    return %arg0, %c0_i32, %c0_i32_0 : i32, i32, i32
  }
}

</mosaic_0001>

<bundles_post_ra>
// kernel: tpu_custom_call.1
= control target key start
LH: loop header
LB: loop body
LE: loop exit
PB: predicated region body
PF: predicated region fallthrough
CT: control target
= control target key end

     0   :  { %s6733_s0 = inlined_call_operand.vmem [shape: f32[2,16,10], index: 0, kind: input, shape index: {}]   ;;  %s6734_s1 = inlined_call_operand.vmem [shape: f32[1,6], index: 1, kind: input, shape index: {}]   ;;  %s6735_s2 = inlined_call_operand.vmem [shape: f32[64,6], index: 2, kind: input, shape index: {}]   ;;  %s6736_s3 = inlined_call_operand.vmem [shape: f32[1,64], index: 3, kind: input, shape index: {}]   ;;  %s6737_s4 = inlined_call_operand.vmem [shape: f32[1,64], index: 4, kind: input, shape index: {}]   ;;  %s6738_s5 = inlined_call_operand.vmem [shape: f32[1,64], index: 5, kind: input, shape index: {}]   ;;  %s6739_s6 = inlined_call_operand.vmem [shape: f32[1,64], index: 6, kind: input, shape index: {}]   ;;  %s6740_s7 = inlined_call_operand.vmem [shape: f32[1,64], index: 7, kind: input, shape index: {}]   ;;  %s6741_s8 = inlined_call_operand.vmem [shape: f32[1,64], index: 8, kind: input, shape index: {}]   ;;  %s6742_s9 = inlined_call_operand.vmem [shape: bf16[3,10,64], index: 9, kind: input, shape index: {}]   ;;  %s6743_s10 = inlined_call_operand.hbm [shape: bf16[3,64,64], index: 10, kind: input, shape index: {}]   ;;  %s6744_s11 = inlined_call_operand.vmem [shape: bf16[1,10,64], index: 11, kind: input, shape index: {}]   ;;  %s6745_s12 = inlined_call_operand.vmem [shape: f32[1,128], index: 12, kind: input, shape index: {}]   ;;  %s6746_s13 = inlined_call_operand.vmem [shape: f32[1,128], index: 13, kind: input, shape index: {}]   ;;  %s6747_s14 = inlined_call_operand.vmem [shape: f32[1,128], index: 14, kind: input, shape index: {}]   ;;  %s6748_s15 = inlined_call_operand.vmem [shape: f32[1,128], index: 15, kind: input, shape index: {}]   ;;  %s6749_s16 = inlined_call_operand.vmem [shape: f32[1,128], index: 16, kind: input, shape index: {}]   ;;  %s6750_s17 = inlined_call_operand.vmem [shape: f32[1,128], index: 17, kind: input, shape index: {}]   ;;  %s6751_s18 = inlined_call_operand.hbm [shape: bf16[5,64,128], index: 18, kind: input, shape index: {}]   ;;  %s6752_s19 = inlined_call_operand.hbm [shape: bf16[640,128], index: 19, kind: input, shape index: {}]   ;;  %s6753_s20 = inlined_call_operand.vmem [shape: bf16[1,64,128], index: 20, kind: input, shape index: {}]   ;;  %s6754_s21 = inlined_call_operand.vmem [shape: f32[1,128], index: 21, kind: input, shape index: {}]   ;;  %s6755_s22 = inlined_call_operand.vmem [shape: f32[1,128], index: 22, kind: input, shape index: {}]   ;;  %s6756_s23 = inlined_call_operand.vmem [shape: f32[1,128], index: 23, kind: input, shape index: {}]   ;;  %s6757_s24 = inlined_call_operand.vmem [shape: f32[1,128], index: 24, kind: input, shape index: {}]   ;;  %s6758_s25 = inlined_call_operand.vmem [shape: bf16[384,128], index: 25, kind: input, shape index: {}]   ;;  %s6759_s26 = inlined_call_operand.hbm [shape: bf16[384,128], index: 26, kind: input, shape index: {}]   ;;  %s6760_s27 = inlined_call_operand.hbm [shape: f32[2,1,6], index: 27, kind: output, shape index: {}]  }
   0x1   :  { %6777 = sst [smem:[#allocation23_spill]] %s6733_s0 }
   0x2   :  { %6778 = sst [smem:[#allocation24_spill]] %s6734_s1 }
   0x3   :  { %6779 = sst [smem:[#allocation25_spill]] %s6735_s2 }
   0x4   :  { %6780 = sst [smem:[#allocation26_spill]] %s6736_s3 }
   0x5   :  { %6781 = sst [smem:[#allocation27_spill]] %s6737_s4 }
   0x6   :  { %6782 = sst [smem:[#allocation28_spill]] %s6738_s5 }
   0x7   :  { %6783 = sst [smem:[#allocation29_spill]] %s6739_s6 }
   0x8   :  { %6784 = sst [smem:[#allocation30_spill]] %s6740_s7 }
   0x9   :  { %6785 = sst [smem:[#allocation31_spill]] %s6741_s8 }
   0xa   :  { %6786 = sst [smem:[#allocation32_spill]] %s6742_s9 }
   0xb   :  { %6787 = sst [smem:[#allocation33_spill]] %s6743_s10 }
   0xc   :  { %6788 = sst [smem:[#allocation34_spill]] %s6744_s11 }
   0xd   :  { %6789 = sst [smem:[#allocation35_spill]] %s6754_s21 }
   0xe   :  { %6790 = sst [smem:[#allocation36_spill]] %s6755_s22 }
   0xf   :  { %6791 = sst [smem:[#allocation37_spill]] %s6757_s24 }
  0x10   :  { %6792 = sst [smem:[#allocation38_spill]] %s6760_s27 }
  0x11   :  { %32 = vsyncpa [#allocation3], 0 }
  0x12   :  { %33 = vsyncpa [#allocation6], 0 }
  0x13   :  { %34 = vsyncpa [#allocation9], 0 }
  0x14   :  { %35 = vsyncpa [#allocation4], 0 }
  0x15   :  { %37 = vsyncpa [#allocation4 + $0x1], 0  ;;  %s6050_s7 = smov 0   ;;  %s6052_s4 = smov 0  }
  0x16   :  { %s6054_s8 = smov 0   ;;  %s6056_s30 = smov 0  }
  0x17 LB: > { %6793 = sst [smem:[#allocation15_spill]] %s5885_s7  ;;  %s6071_s9 = sadd.s32 4294967295, %s5897_s30   ;;  %s5897_s30 = sphi %s6056_s30, %s6836_s30   ;;  %s5893_s8 = sphi %s6054_s8, %s6839_s8   ;;  %s5889_s4 = sphi %s6052_s4, %s6838_s4   ;;  %s5885_s7 = sphi %s6050_s7, %s6837_s7  }
  0x18   : > { %6794 = sst [smem:[#allocation16_spill]] %s5889_s4  ;;  %s4661_s5 = sadd.s32 4294967294, %s5897_s30  }
  0x19   : > { %6795 = sst [smem:[#allocation17_spill]] %s5893_s8  ;;  %s6075_s28 = sadd.s32 1, %s5897_s30  }
  0x1a   : > { %6796 = sst [smem:[#allocation18_spill]] %s5897_s30  ;;  %s622_s0 = sadd.s32 1, %s5893_s8 }
  0x1b   : > { %6797 = sst [smem:[#allocation19_spill]] %s6075_s28  ;;  %s619_s10 = ssub.s32 %s5897_s30, %s6075_s28 }
  0x1c   : > { %p632_p0 = scmp.ne.s32.totalorder %s5893_s8, %s5889_s4  ;;  %p620_p1 = scmp.eq.s32.totalorder %s619_s10, 0 }
  0x1d   : > { %p633_p2 = scmp.eq.s32.totalorder %s6071_s9, 1  ;;  %p638_p3 = scmp.ne.s32.totalorder %s5889_s4, %s5885_s7 }
  0x1e   : > { %p639_p4 = scmp.eq.s32.totalorder %s4661_s5, 1  ;;  %p4662_p7 = scmp.ge.s32.totalorder %s5897_s30, 1 }
  0x1f   : > { %s6086_s29 = scalar_select %p620_p1, %s5893_s8, %s622_s0  }
  0x20   : > { %p6088_p5 = por %p633_p2, %p632_p0  ;;  %p6092_p6 = por %p639_p4, %p638_p3 }
  0x21   : > { %6798 = sst [smem:[#allocation20_spill]] %s6086_s29  ;;  %p646_p8 = scmp.lt.s32.totalorder %s5897_s30, 3 }
  0x22   : > { %s6799_s1 = scalar_select %p6088_p5, 1, 0 }
  0x23   : > { %s6801_s6 = scalar_select %p6092_p6, 1, 0 }
  0x24   : > { %6800 = sst [smem:[#allocation21_spill]] %s6799_s1  ;;  %p6771_p9 = scmp.eq.s32.totalorder %s6071_s9, 0 }
  0x25   : > { %6802 = sst [smem:[#allocation22_spill]] %s6801_s6  ;;  %p6099_p10 = pnand %p4662_p7, %p646_p8 }
  0x26   : > { %s5899_s2 = smov [#allocation5]   ;;  %s5900_s0 = smov [#allocation2]  }
  0x27   : > { %s6803_s11 = scalar_select %p6099_p10, 1, 0 }
  0x28   : > { %p5511_p11 = pneg %p6099_p10  ;;  %s719_s3 = sshll.u32 %s5899_s2, 4  ;;  %s6105_s3 = int_to_ptr.vmem [resolvable:$true] %s719_s3 }
  0x29   : > { %s685_s10 = sshll.u32 %s5900_s0, 4  ;;  %s5901_s29 = smov [#allocation7]   ;;  %s6113_s10 = int_to_ptr.vmem [resolvable:$true] %s685_s10 }
  0x2a   : > { %p6109_p12 = pnand %p6771_p9, %p5511_p11  ;;  %s6115_s8 = sshll.u32 %s5901_s29, 4  ;;  %s733_s8 = int_to_ptr.vmem [resolvable:$true] %s6115_s8 }
  0x2b   : > { %s5711_s7 = scalar_lea.hbm %s6751_s18, 2560 }
  0x2c   : > { %p5712_p13 = scmp.ne.s32.totalorder %s6751_s18, %s5711_s7  ;;  %p6125_p0 = pneg %p6109_p12 }
  0x2d   : > { %p5718_p3 = scmp.lt.u32.totalorder %s5711_s7, %s6751_s18 }
  0x2e   : > { %p5714_p1 = pnand %p6125_p0, %p5712_p13 }
  0x30   : > { %p5715_p2 = pneg %p5714_p1 }
  0x32   : > { %p5720_p4 = pnand %p5718_p3, %p5715_p2 }
  0x34   : > { %5723 = shalt.err (!%p5720_p4)
}
  0x35   : > { %s5724_s30 = scalar_lea.vmem %s6105_s3, 2560  ;;  %p5732_p9 = scmp.lt.s32.totalorder %s6105_s3, %s6105_s3 }
  0x36   : > { %p5725_p7 = scmp.ne.s32.totalorder %s6105_s3, %s5724_s30  ;;  %p5733_p6 = scmp.lt.s32.totalorder %s5724_s30, %s5724_s30 }
  0x38   : > { %p5727_p8 = pnand %p5725_p7, %p6125_p0  ;;  %p5734_p13 = por %p5733_p6, %p5732_p9 }
  0x3a   : > { %p5728_p11 = pneg %p5727_p8 }
  0x3c   : > { %p5735_p1 = pnand %p5734_p13, %p5728_p11 }
  0x3e   : > { %5738 = shalt.err (!%p5735_p1)
}
  0x3f   : > { %s5902_s28 = smov 64   ;;  %s5903_s7 = smov 4  }
  0x40   : > { %5517 = dma.hbm_to_vmem [thread:$0]  (!%p6109_p12), %s6751_s18, 2560, %s6105_s3, [#allocation6], %s5902_s28, %s5902_s28, %s5903_s7  }
  0x41   : > { %s6806_s1 = sld [smem:[#allocation33_spill]] }
  0x47   : > { %s5739_s30 = scalar_lea.hbm %s6806_s1, 1536 }
  0x48   : > { %p5740_p6 = scmp.ne.s32.totalorder %s6806_s1, %s5739_s30  ;;  %p5746_p3 = scmp.lt.u32.totalorder %s5739_s30, %s6806_s1 }
  0x4a   : > { %p5742_p9 = pnand %p5740_p6, %p6125_p0 }
  0x4c   : > { %p5743_p2 = pneg %p5742_p9 }
  0x4e   : > { %p5748_p4 = pnand %p5746_p3, %p5743_p2 }
  0x50   : > { %5751 = shalt.err (!%p5748_p4)
}
  0x51   : > { %s5752_s3 = scalar_lea.vmem %s6113_s10, 1536  ;;  %p5760_p13 = scmp.lt.s32.totalorder %s6113_s10, %s6113_s10 }
  0x52   : > { %p5753_p7 = scmp.ne.s32.totalorder %s6113_s10, %s5752_s3  ;;  %p5761_p1 = scmp.lt.s32.totalorder %s5752_s3, %s5752_s3 }
  0x54   : > { %p5755_p8 = pnand %p5753_p7, %p6125_p0  ;;  %p5762_p6 = por %p5761_p1, %p5760_p13 }
  0x56   : > { %p5756_p11 = pneg %p5755_p8 }
  0x58   : > { %p5763_p9 = pnand %p5762_p6, %p5756_p11 }
  0x5a   : > { %5766 = shalt.err (!%p5763_p9)
}
  0x5b   : > { %5514 = dma.hbm_to_vmem [thread:$0]  (!%p6109_p12), %s6806_s1, 1536, %s6113_s10, [#allocation3], %s5902_s28, %s5902_s28, %s5903_s7  }
  0x5c   : > { %s5767_s6 = scalar_lea.hbm %s6752_s19, 5120 }
  0x5d   : > { %p5768_p2 = scmp.ne.s32.totalorder %s6752_s19, %s5767_s6  ;;  %p5774_p7 = scmp.lt.u32.totalorder %s5767_s6, %s6752_s19 }
  0x5f   : > { %p5770_p3 = pnand %p5768_p2, %p6125_p0 }
  0x61   : > { %p5771_p4 = pneg %p5770_p3 }
  0x63   : > { %p5776_p8 = pnand %p5774_p7, %p5771_p4 }
  0x65   : > { %5779 = shalt.err (!%p5776_p8)
}
  0x66   : > { %s5780_s3 = scalar_lea.vmem %s733_s8, 5120  ;;  %p5788_p6 = scmp.lt.s32.totalorder %s733_s8, %s733_s8 }
  0x67   : > { %p5781_p11 = scmp.ne.s32.totalorder %s733_s8, %s5780_s3  ;;  %p5789_p9 = scmp.lt.s32.totalorder %s5780_s3, %s5780_s3 }
  0x69   : > { %p5783_p13 = pnand %p5781_p11, %p6125_p0  ;;  %p5790_p5 = por %p5789_p9, %p5788_p6 }
  0x6b   : > { %p5784_p1 = pneg %p5783_p13 }
  0x6d   : > { %p5791_p10 = pnand %p5790_p5, %p5784_p1 }
  0x6f   : > { %5794 = shalt.err (!%p5791_p10)
}
  0x70   : > { %5520 = dma.hbm_to_vmem [thread:$0]  (!%p6109_p12), %s6752_s19, 5120, %s733_s8, [#allocation6], %s5902_s28, %s5902_s28, %s5903_s7  }
  0x71   : > { %s5904_s22 = smov [#allocation8]   ;;  %s5795_s2 = scalar_lea.hbm %s6759_s26, 3072 }
  0x72   : > { %s763_s24 = sshll.u32 %s5904_s22, 4  ;;  %p5796_p5 = scmp.ne.s32.totalorder %s6759_s26, %s5795_s2  ;;  %s764_s24 = int_to_ptr.vmem [resolvable:$true] %s763_s24 }
  0x73   : > { %p5802_p3 = scmp.lt.u32.totalorder %s5795_s2, %s6759_s26 }
  0x74   : > { %p5798_p10 = pnand %p5796_p5, %p6125_p0 }
  0x76   : > { %p5799_p2 = pneg %p5798_p10 }
  0x78   : > { %p5804_p4 = pnand %p5802_p3, %p5799_p2 }
  0x7a   : > { %5807 = shalt.err (!%p5804_p4)
}
  0x7b   : > { %s5808_s8 = scalar_lea.vmem %s764_s24, 3072  ;;  %p5816_p13 = scmp.lt.s32.totalorder %s764_s24, %s764_s24 }
  0x7c   : > { %p5809_p7 = scmp.ne.s32.totalorder %s764_s24, %s5808_s8  ;;  %p5817_p1 = scmp.lt.s32.totalorder %s5808_s8, %s5808_s8 }
  0x7e   : > { %p5811_p8 = pnand %p5809_p7, %p6125_p0  ;;  %p5818_p6 = por %p5817_p1, %p5816_p13 }
  0x80   : > { %p5812_p11 = pneg %p5811_p8 }
  0x82   : > { %p5819_p9 = pnand %p5818_p6, %p5812_p11 }
  0x84   : > { %5822 = shalt.err (!%p5819_p9)
}
  0x85   : > { %5523 = dma.hbm_to_vmem [thread:$0]  (!%p6109_p12), %s6759_s26, 3072, %s764_s24, [#allocation9], %s5902_s28, %s5902_s28, %s5903_s7  }
  0x86   : > { %p6807_p5 = scmp.ne.s32.totalorder %s6803_s11, 0 }
  0x87   : > { %p6808_p0 = scmp.eq.s32.totalorder (!%p6807_p5), %s6071_s9, 0 }
  0x88   : > { %787 = sbr.rel (%p6807_p5) target bundleno = 4149 (0x1035), region = 128 }
  0x8f   : > { %5868 = dma.done.wait (%p6808_p0), [#allocation3], 1536   ;;  %p6809_p10 = pmov %p6808_p0 }
  0x90   : > { %p6810_p2 = pmov %p6808_p0 }
  0x91   : > { %5870 = vsyncadd (%p6809_p10), [#allocation3], 4294965760 }
  0x92   : > { %5872 = dma.done.wait (%p6810_p2), [#allocation6], 7680   ;;  %p6811_p3 = pmov %p6808_p0 }
  0x93   : > { %p6812_p4 = pmov %p6808_p0 }
  0x94   : > { %5874 = vsyncadd (%p6811_p3), [#allocation6], 4294959616 }
  0x95   : > { %5876 = dma.done.wait (%p6812_p4), [#allocation9], 3072   ;;  %p6813_p12 = pmov %p6808_p0 }
  0x96   : > { %p870_p7 = scmp.lt.s32.totalorder %s6071_s9, 1  ;;  %v878_v0 = vlaneseq  ;;  %v5905_v1 = vmov 0.0   ;;  %vm5906_vm0 = vmmov 0   ;;  %s6814_s7 = sld [smem:[#allocation23_spill]]  ;;  %vm891_vm1 = vcmask 130048   ;;  %v5583_v43 = vld [vmem:[#allocation2 + $0x20] sm:$0xff]  }
  0x97   : > { %5878 = vsyncadd (%p6813_p12), [#allocation9], 4294964224  ;;  %5111 = vmatprep.subr.bf16.mxu1 %v5905_v1  ;;  %5113 = vmatprep.mubr.msk.bf16.mxu1 %vm5906_vm0, %v5905_v1  ;;  %vm989_vm4 = vcmask 1044480   ;;  %s6815_s6 = sld [smem:[#allocation32_spill]]  ;;  %vm985_vm7 = vcmask 80896   ;;  %s6816_s10 = sld [smem:[#allocation34_spill]] }
  0x98   : > { %s871_s27 = scalar_select %p870_p7, %s6071_s9, 1  ;;  %v6235_v2 = vshrl.u32 %v878_v0, 7  ;;  %v6237_v3 = vand.u32 127, %v878_v0  ;;  %v5584_v44 = vld [vmem:[#allocation2 + $0x28] sm:$0xff]   ;;  %v5585_v45 = vld [vmem:[#allocation2 + $0x30] sm:$0xff]   ;;  %v5586_v46 = vld [vmem:[#allocation2 + $0x38] sm:$0xff]  }
  0x99   : > { %vm1440_vm8 = vcmask 523264   ;;  %v5587_v47 = vld [vmem:[#allocation2] sm:$0xff]   ;;  %v5588_v48 = vld [vmem:[#allocation2 + $0x8] sm:$0xff]   ;;  %v5589_v49 = vld [vmem:[#allocation2 + $0x10] sm:$0xff]   ;;  %s6819_s4 = sld [smem:[#allocation31_spill]]  ;;  %s6820_s29 = sld [smem:[#allocation30_spill]] }
  0x9a   : > { %s4876_s11 = sshll.u32 %s871_s27, 4  ;;  %v883_v4 = vadd.s32 4294967295, %v6235_v2  ;;  %v880_v5 = vadd.s32 8, %v6235_v2  ;;  %v1086_v6 = vadd.s32 1, %v6235_v2  ;;  %v5590_v54 = vld [vmem:[#allocation2 + $0x18] sm:$0xff]   ;;  %v5591_v58 = vld [vmem:[#allocation2 + $0x40] sm:$0xff]  }
  0x9b   : > { %v5592_v62 = vld [vmem:[#allocation2 + $0x48] sm:$0xff]   ;;  %v5593_v63 = vld [vmem:[#allocation2 + $0x50] sm:$0xff]   ;;  %v5594_v0 = vld [vmem:[#allocation2 + $0x58] sm:$0xff]   ;;  %s6821_s8 = sld [smem:[#allocation28_spill]]  ;;  %s6822_s27 = sld [smem:[#allocation27_spill]]  ;;  %vm1889_vm12 = vcmask 64512  }
  0x9c   : > { %s874_s22 = scalar_lea.vmem %s6814_s7, %s4876_s11  ;;  %vm885_vm2 = vcmp.eq.s32.totalorder %v6237_v3, %v883_v4  ;;  %v884_v7 = vadd.s32 4294967295, %v880_v5  ;;  %vm1088_vm3 = vcmp.eq.s32.totalorder %v6237_v3, %v1086_v6  ;;  %v1087_v8 = vadd.s32 1, %v880_v5  ;;  %s6817_s11 = sld [smem:[#allocation29_spill]] }
  0x9d   : > { %v876_v9 = vld [vmem:[%s874_s22] sm:$0xff]  ;;  %v877_v10 = vld [vmem:[%s874_s22 + $0x8] sm:$0xff]  ;;  %v6250_v11 = vsel %vm885_vm2, 1.0, %v5905_v1  ;;  %v6260_v14 = vsel %vm1088_vm3, 1.0, %v5905_v1  ;;  %v5581_v20 = vld [vmem:[%s6815_s6 + $0x10] sm:$0x1f]  }
  0x9e   : > { %v5427_v12 = vpack.c.bf16 %v877_v10, %v876_v9  ;;  %5108 = vmatprep.mubr.msk.f32.mxu0 %vm891_vm1, %v6250_v11  ;;  %vm886_vm5 = vcmp.eq.s32.totalorder %v6237_v3, %v884_v7  ;;  %vm1089_vm6 = vcmp.eq.s32.totalorder %v6237_v3, %v1087_v8  ;;  %v5579_v13 = vld [vmem:[%s6815_s6 + $0x8] sm:$0x1f]   ;;  %v5580_v15 = vld [vmem:[%s6815_s6] sm:$0x1f]   ;;  %v1188_v24 = vsel %vm989_vm4, %v5581_v20, 0  ;;  %s6818_s7 = sld [smem:[#allocation26_spill]] }
  0x9f   : > { %v4676_v16 = vsel %vm886_vm5, 1.0, %v5905_v1  ;;  %v991_v17 = vsel %vm989_vm4, %v5579_v13, 0  ;;  %v4686_v18 = vsel %vm1089_vm6, 1.0, %v5905_v1  ;;  %v1043_v19 = vsel %vm989_vm4, %v5580_v15, 0  ;;  %v5582_v28 = vld [vmem:[%s6816_s10] sm:$0x1f]  }
  0xa0   : > { %5428 = vmatprep.subr.bf16.mxu0 %v5427_v12  ;;  %5112 = vmatpush3.bf16.msra.mxu1 %v991_v17  ;;  %v1261_v29 = vsel %vm989_vm4, %v5582_v28, 0  ;;  %v5907_v4 = vmov 0.0|0.0   ;;  %v4697_v5 = vld [vmem:[%s6819_s4] ss:$0 sm:$0xff]  ;;  %v1730_v17 = vmul.u32 2, %v6235_v2  ;;  %vm3567_vm14 = vcmask 1043456  }
  0xa1   : > { %5430 = vmatpush3.bf16.msra.mxu0 %v5427_v12  ;;  %5117 = vmatprep.subr.bf16.mxu1 %v5905_v1  ;;  %v4718_v6 = vld [vmem:[%s6820_s29] ss:$0 sm:$0xff]  ;;  %vm3564_vm15 = vcmask 31744   ;;  %s6823_s0 = sld [smem:[#allocation35_spill]]  ;;  %s6824_s3 = sld [smem:[#allocation37_spill]]  ;;  %vm4550_vm2 = vcmask 40960  }
  0xa2   : > { %5432 = vmatprep.subr.bf16.mxu0 %v5427_v12  ;;  %v4693_v30 = vld [vmem:[%s6817_s11] ss:$0 sm:$0xff]  ;;  %vm1731_vm9 = vcmp.eq.s32.totalorder %v6237_v3, %v1730_v17  ;;  %s6825_s21 = sld [smem:[#allocation36_spill]]  ;;  %s6826_s28 = sld [smem:[#allocation25_spill]] }
  0xa3   : > { %5114 = vmatmul.mubr.msk.bf16.vlgmr.msra.gmra.mrb[0].mxu1 %vm985_vm7, %v5427_v12  ;;  %v4698_v8 = vld [vmem:[%s6821_s8] ss:$0 sm:$0xff]  ;;  %s6828_s22 = sld [smem:[#allocation21_spill]]  ;;  %s4873_s29 = sshll.u32 %s6071_s9, 4 }
  0xa4   : > { %5109 = vmatmul.mubr.msk.f32.vlgmr.msra.gmra.mrb[0].mxu0 %vm891_vm1, %v4676_v16  ;;  %5118 = vmatpush3.bf16.msra.mxu1 %v1043_v19  ;;  %v4694_v32 = vld [vmem:[%s6818_s7] ss:$0 sm:$0xff]  ;;  %s6827_s7 = sld [smem:[#allocation16_spill]]  ;;  %s5909_s9 = smov [#allocation10]  }
  0xa5   : > { %5434 = vmatpush3.bf16.msra.mxu0 %v5427_v12  ;;  %5127 = vmatprep.mubr.msk.f32.mxu0 %vm891_vm1, %v6260_v14  ;;  %v4719_v10 = vld [vmem:[%s6822_s27] ss:$0 sm:$0xff]  ;;  %s5908_s27 = smov 64  }
  0xa6   : > { %5119 = vmatprep.mubr.msk.bf16.mxu1 %vm5906_vm0, %v5905_v1  ;;  %5130 = vmatprep.subr.bf16.mxu1 %v5905_v1 }
  0xa7   : > { %5136 = vmatprep.subr.bf16.mxu0 %v5905_v1 }
  0xa8   : > { %5128 = vmatmul.mubr.msk.f32.vlgmr.msra.gmra.mrb[2].mxu0 %vm891_vm1, %v4686_v18 }
  0xa9   : > { %5138 = vmatprep.mubr.msk.bf16.mxu0 %vm5906_vm0, %v5905_v1  ;;  %5137 = vmatpush3.bf16.msra.mxu0 %v1261_v29  ;;  %p6831_p11 = scmp.ne.s32.totalorder %s6828_s22, 0 }
  0xaa   : > { %s868_s24 = sand.u32 1, %s6827_s7   ;;  %s5827_s7 = sshll.u32 %s5909_s9, 4  ;;  %s5828_s7 = int_to_ptr.vmem [resolvable:$false] %s5827_s7 }
  0xab   : > { %s869_s30 = scalar_lea.vmem [#allocation10], %s868_s24  ;;  %s4553_s11 = scalar_lea.sflag [#allocation4], %s868_s24 }
  0xac   : > { %5139 = vmatmul.mubr.msk.bf16.vlgmr.msra.gmra.mrb[4].mxu0 %vm985_vm7, %v5427_v12  ;;  %s5829_s4 = scalar_lea.vmem %s5828_s7, 32 }
  0xad   : > { %5146 = vmatprep.mubr.msk.f32.mxu0 %vm891_vm1, %v6250_v11 }
 0x177   : > { %v5110_v21 = vpop.f32.mrb[0].mxu0 }
 0x178   : > { %v964_v22 = vpop.f32.mrb[1].mxu0 }
 0x179   : > { %v973_v23 = vpack.c.bf16 %v5110_v21, %v964_v22 }
 0x17b   : > { %5120 = vmatmul.mubr.msk.bf16.vlgmr.msra.gmra.mrb[0].mxu1 %vm985_vm7, %v973_v23  ;;  %v5129_v25 = vpop.f32.mrb[2].mxu0 }
 0x17c   : > { %5131 = vmatpush3.bf16.msra.mxu1 %v1188_v24  ;;  %v1166_v26 = vpop.f32.mrb[3].mxu0  ;;  %5132 = vmatprep.mubr.msk.bf16.mxu1 %vm5906_vm0, %v5905_v1 }
 0x17d   : > { %v1175_v27 = vpack.c.bf16 %v5129_v25, %v1166_v26  ;;  %v1734_v25 = vadd.s32 1, %v1730_v17  ;;  %v5615_v17 = vld [vmem:[#allocation5 + $0x80] sm:$0xff]  }
 0x17f   : > { %v1297_v50 = vpop.f32.mrb[4].mxu0  ;;  %vm1735_vm10 = vcmp.eq.s32.totalorder %v6237_v3, %v1734_v25  ;;  %v5628_v25 = vld [vmem:[#allocation7 + $0x88] sm:$0xff]  }
 0x180   : > { %v5140_v51 = vpop.f32.mrb[5].mxu0  ;;  %v1311_v7 = vmul.f32 %v4697_v5, %v1297_v50 }
 0x181   : > { %v1300_v52 = vpop.f32.mrb[6].mxu0 }
 0x182   : > { %v5141_v53 = vpop.f32.mrb[7].mxu0  ;;  %v1312_v12 = vmul.f32 %v4697_v5, %v1300_v52 }
 0x183   : > { %v5603_v53 = vld [vmem:[#allocation5] sm:$0xff]  }
 0x184   : > { %v1321_v22 = vadd.f32 %v4698_v8, %v1312_v12  ;;  %v5612_v12 = vld [vmem:[#allocation5 + $0x68] sm:$0xff]  }
 0x187   : > { %5133 = vmatmul.mubr.msk.bf16.vlgmr.msra.gmra.mrb[0].mxu1 %vm985_vm7, %v1175_v27 }
 0x188   : > { %5177 = vmatprep.mubr.msk.f32.mxu1 %vm891_vm1, %v6260_v14 }
 0x25a   : > { %v1224_v31 = vpop.f32.mrb[0].mxu1 }
 0x25b   : > { %v1240_v33 = vmul.f32 %v4693_v30, %v1224_v31  ;;  %v5134_v34 = vpop.f32.mrb[1].mxu1  ;;  %v6352_v31 = vsel %vm1735_vm10, 1.0, %v5905_v1 }
 0x25c   : > { %v1227_v35 = vpop.f32.mrb[2].mxu1 }
 0x25d   : > { %v1249_v36 = vadd.f32 %v4694_v32, %v1240_v33  ;;  %v1241_v37 = vmul.f32 %v4693_v30, %v1227_v35  ;;  %v5135_v38 = vpop.f32.mrb[3].mxu1  ;;  %v6349_v30 = vsel %vm1731_vm9, 1.0, %v5905_v1  ;;  %v2416_v33 = vadd.s32 2, %v6235_v2 }
 0x25f   : > { %v1250_v39 = vadd.f32 %v4694_v32, %v1241_v37  ;;  %v1251_v40 = vmax.f32 %v1249_v36, 0.0  ;;  %v1885_v32 = vadd.s32 4294967294, %v6235_v2  ;;  %vm2417_vm13 = vcmp.eq.s32.totalorder %v6237_v3, %v2416_v33  ;;  %v5640_v33 = vld [vmem:[#allocation7 + $0xa0] sm:$0xff]  }
 0x260   : > { %v6378_v2 = vsel %vm2417_vm13, 1.0, %v5905_v1 }
 0x261   : > { %v1252_v41 = vmax.f32 %v1250_v39, 0.0  ;;  %vm1886_vm11 = vcmp.eq.s32.totalorder %v6237_v3, %v1885_v32  ;;  %v5599_v3 = vld [vmem:[#allocation5 + $0x20] sm:$0xff]  }
 0x262   : > { %v6368_v39 = vsel %vm1886_vm11, 1.0, %v5905_v1  ;;  %v5639_v32 = vld [vmem:[#allocation7 + $0xe0] sm:$0xff]  }
 0x263   : > { %v5435_v42 = vpack.c.bf16 %v1252_v41, %v1251_v40  ;;  %v5595_v40 = vld [vmem:[%s6753_s20] sm:$0xff]   ;;  %v5596_v41 = vld [vmem:[%s6753_s20 + $0x8] sm:$0xff]  }
 0x265   : > { %5436 = vmatprep.subr.bf16.mxu0 %v5435_v42  ;;  %5440 = vmatprep.subr.bf16.mxu1 %v5435_v42 }
 0x266   : > { %5438 = vmatpush3.bf16.msra.mxu0 %v5435_v42  ;;  %5442 = vmatpush3.bf16.msra.mxu1 %v5435_v42 }
 0x267   : > { %5149 = vmatprep.subr.bf16.mxu0 %v5905_v1  ;;  %5446 = vmatprep.subr.bf16.mxu1 %v5907_v4 }
 0x269   : > { %5147 = vmatmul.mubr.msk.f32.vlgmr.msra.gmra.mrb[8].mxu0 %vm891_vm1, %v4676_v16  ;;  %5178 = vmatmul.mubr.msk.f32.vlgmr.msra.gmra.mrb[4].mxu1 %vm891_vm1, %v4686_v18  ;;  %v1320_v18 = vadd.f32 %v4698_v8, %v1311_v7  ;;  %v5608_v7 = vld [vmem:[#allocation5 + $0x48] sm:$0xff]   ;;  %v5609_v8 = vld [vmem:[#allocation5 + $0x50] sm:$0xff]  }
 0x26a   : > { %5150 = vmatpush3.bf16.msra.mxu0 %v5583_v43  ;;  %5157 = vmatprep.mubr.msk.bf16.mxu0 %vm5906_vm0, %v5905_v1  ;;  %v5597_v43 = vld [vmem:[%s6753_s20 + $0x10] sm:$0xff]  }
 0x26b   : > { %5151 = vmatprep.subr.bf16.mxu0 %v5905_v1  ;;  %5203 = vmatprep.mubr.msk.f32.mxu1 %vm5906_vm0, %v5905_v1 }
 0x26e   : > { %5152 = vmatpush3.bf16.msra.mxu0 %v5584_v44  ;;  %v5601_v44 = vld [vmem:[#allocation5 + $0x30] sm:$0xff]  }
 0x26f   : > { %5153 = vmatprep.subr.bf16.mxu0 %v5905_v1 }
 0x272   : > { %5154 = vmatpush3.bf16.msra.mxu0 %v5585_v45  ;;  %v5598_v45 = vld [vmem:[%s6753_s20 + $0x18] sm:$0xff]  }
 0x273   : > { %5155 = vmatprep.subr.bf16.mxu0 %v5905_v1 }
 0x276   : > { %5156 = vmatpush3.bf16.msra.mxu0 %v5586_v46 }
 0x277   : > { %5161 = vmatprep.subr.bf16.mxu0 %v5905_v1 }
 0x279   : > { %5158 = vmatmul.mubr.msk.bf16.vlgmr.msra.gmra.mrb[12].mxu0 %vm1440_vm8, %v5435_v42  ;;  %v5600_v42 = vld [vmem:[#allocation5 + $0x28] sm:$0xff]  }
 0x27a   : > { %5162 = vmatpush3.bf16.msra.mxu0 %v5587_v47  ;;  %5169 = vmatprep.mubr.msk.bf16.mxu0 %vm5906_vm0, %v5905_v1  ;;  %v5602_v47 = vld [vmem:[#allocation5 + $0x38] sm:$0xff]  }
 0x27b   : > { %5163 = vmatprep.subr.bf16.mxu0 %v5905_v1 }
 0x27e   : > { %5164 = vmatpush3.bf16.msra.mxu0 %v5588_v48 }
 0x27f   : > { %5165 = vmatprep.subr.bf16.mxu0 %v5905_v1 }
 0x282   : > { %5166 = vmatpush3.bf16.msra.mxu0 %v5589_v49 }
 0x283   : > { %5167 = vmatprep.subr.bf16.mxu0 %v5905_v1 }
 0x286   : > { %5168 = vmatpush3.bf16.msra.mxu0 %v5590_v54 }
 0x287   : > { %5180 = vmatprep.subr.bf16.mxu0 %v5905_v1 }
 0x33c   : > { %v5148_v55 = vpop.f32.mrb[8].mxu0  ;;  %v5179_v56 = vpop.f32.mrb[4].mxu1 }
 0x33d   : > { %v1388_v57 = vpop.f32.mrb[9].mxu0  ;;  %v1619_v59 = vpop.f32.mrb[5].mxu1 }
 0x33e   : > { %v1397_v60 = vpack.c.bf16 %v5148_v55, %v1388_v57  ;;  %v1628_v61 = vpack.c.bf16 %v5179_v56, %v1619_v59  ;;  %v5605_v59 = vld [vmem:[#allocation5 + $0x10] sm:$0xff]  }
 0x340   : > { %5170 = vmatmul.mubr.msk.bf16.vlgmr.msra.gmra.mrb[12].mxu0 %vm1440_vm8, %v1397_v60  ;;  %v5606_v60 = vld [vmem:[#allocation5 + $0x18] sm:$0xff]  }
 0x341   : > { %5181 = vmatpush3.bf16.msra.mxu0 %v5591_v58  ;;  %5188 = vmatprep.mubr.msk.bf16.mxu0 %vm5906_vm0, %v5905_v1  ;;  %v5604_v58 = vld [vmem:[#allocation5 + $0x8] sm:$0xff]  }
 0x342   : > { %5182 = vmatprep.subr.bf16.mxu0 %v5905_v1 }
 0x345   : > { %5183 = vmatpush3.bf16.msra.mxu0 %v5592_v62 }
 0x346   : > { %5184 = vmatprep.subr.bf16.mxu0 %v5905_v1 }
 0x349   : > { %5185 = vmatpush3.bf16.msra.mxu0 %v5593_v63 }
 0x34a   : > { %5186 = vmatprep.subr.bf16.mxu0 %v5905_v1 }
 0x34d   : > { %5187 = vmatpush3.bf16.msra.mxu0 %v5594_v0 }
 0x34e   : > { %5443 = vmatprep.subr.bf16.mxu0 %v5907_v4 }
 0x350   : > { %5189 = vmatmul.mubr.msk.bf16.vlgmr.msra.gmra.mrb[12].mxu0 %vm1440_vm8, %v1628_v61  ;;  %v5607_v61 = vld [vmem:[#allocation5 + $0x40] sm:$0xff]  }
 0x351   : > { %5196 = vmatprep.mubr.msk.f32.mxu0 %vm5906_vm0, %v5905_v1 }
 0x423   : > { %v1699_v9 = vpop.f32.mrb[12].mxu0 }
 0x424   : > { %v1715_v13 = vmul.f32 %v4718_v6, %v1699_v9  ;;  %v5190_v15 = vpop.f32.mrb[13].mxu0  ;;  %v5610_v9 = vld [vmem:[#allocation5 + $0x58] sm:$0xff]  }
 0x425   : > { %v1702_v16 = vpop.f32.mrb[14].mxu0  ;;  %v5614_v15 = vld [vmem:[#allocation5 + $0x78] sm:$0xff]  }
 0x426   : > { %v1724_v19 = vadd.f32 %v4719_v10, %v1715_v13  ;;  %v1716_v20 = vmul.f32 %v4718_v6, %v1702_v16  ;;  %v5191_v21 = vpop.f32.mrb[15].mxu0  ;;  %v5613_v13 = vld [vmem:[#allocation5 + $0x70] sm:$0xff]  }
 0x428   : > { %v1726_v23 = vadd.f32 %v1724_v19, %v1320_v18  ;;  %v1725_v24 = vadd.f32 %v4719_v10, %v1716_v20  ;;  %v5611_v10 = vld [vmem:[#allocation5 + $0x60] sm:$0xff]   ;;  %v5616_v18 = vld [vmem:[#allocation5 + $0x88] sm:$0xff]   ;;  %v5617_v19 = vld [vmem:[#allocation5 + $0x90] sm:$0xff]  }
 0x429   : > { %v5618_v20 = vld [vmem:[#allocation5 + $0x98] sm:$0xff]  }
 0x42a   : > { %v1727_v26 = vadd.f32 %v1725_v24, %v1321_v22  ;;  %v1728_v27 = vmax.f32 %v1726_v23, 0.0  ;;  %v5623_v22 = vld [vmem:[#allocation7 + $0xc0] sm:$0xff]   ;;  %v5627_v24 = vld [vmem:[#allocation7 + $0xc8] sm:$0xff]  }
 0x42b   : > { %v5624_v23 = vld [vmem:[#allocation7 + $0x80] sm:$0xff]  }
 0x42c   : > { %v1729_v28 = vmax.f32 %v1727_v26, 0.0  ;;  %v5631_v26 = vld [vmem:[#allocation7 + $0xd0] sm:$0xff]  }
 0x42e   : > { %v5444_v29 = vpack.c.bf16 %v1729_v28, %v1728_v27  ;;  %v5632_v27 = vld [vmem:[#allocation7 + $0x90] sm:$0xff]   ;;  %v5635_v28 = vld [vmem:[#allocation7 + $0xd8] sm:$0xff]  }
 0x430   : > { %5445 = vmatpush3.bf16.msra.mxu0 %v5444_v29  ;;  %5448 = vmatpush3.bf16.msra.mxu1 %v5444_v29  ;;  %v5636_v29 = vld [vmem:[#allocation7 + $0x98] sm:$0xff]  }
 0x431   : > { %5206 = vmatprep.subr.mxu1 %v5905_v1  ;;  %5252 = vmatprep.subr.mxu0 %v5905_v1 }
 0x433   : > { %5197 = vmatmul.mubr.msk.f32.vlgmr.msra.gmra.mrb[10].mxu0 %vm891_vm1, %v6349_v30  ;;  %5204 = vmatmul.mubr.msk.f32.vlgmr.msra.gmra.mrb[6].mxu1 %vm891_vm1, %v6352_v31  ;;  %vm4458_vm1 = vcmask 1043968  }
 0x434   : > { %5208 = vmatprep.mubr.msk.f32.mxu1 %vm5906_vm0, %v5905_v1  ;;  %5254 = vmatprep.mubr.msk.f32.mxu0 %vm5906_vm0, %v5905_v1 }
 0x506   : > { %v1807_v34 = vpop.f32.mrb[10].mxu0  ;;  %v1880_v35 = vpop.f32.mrb[6].mxu1 }
 0x507   : > { %v1884_v36 = vmax.f32 %v1807_v34, %v1880_v35  ;;  %v5198_v37 = vpop.f32.mrb[11].mxu0  ;;  %v5205_v38 = vpop.f32.mrb[7].mxu1  ;;  %v4755_v34 = vld [vmem:[%s6748_s15] ss:$0 sm:$0xff] }
 0x509   : > { %5207 = vmatpush3.msra.mxu1 %v1884_v36  ;;  %5253 = vmatpush3.msra.mxu0 %v1884_v36  ;;  %v2188_v46 = vpack.c.bf16 %v1884_v36, %v1884_v36 }
 0x50a   : > { %5209 = vmatmul.mubr.msk.f32.vlgmr.msra.gmra.mrb[8].mxu1 %vm1889_vm12, %v6368_v39  ;;  %5211 = vmatprep.subr.mxu1 %v5905_v1 }
 0x50b   : > { %5255 = vmatmul.mubr.msk.f32.vlgmr.msra.gmra.mrb[16].mxu0 %vm1889_vm12, %v6260_v14  ;;  %5269 = vmatprep.subr.mxu0 %v5905_v1 }
 0x50c   : > { %5212 = vmatpush3.msra.mxu1 %v1884_v36  ;;  %5270 = vmatpush3.msra.mxu0 %v1884_v36  ;;  %v4756_v36 = vld [vmem:[%s6745_s12] ss:$0 sm:$0xff] }
 0x50d   : > { %5213 = vmatprep.mubr.msk.f32.mxu1 %vm5906_vm0, %v5905_v1  ;;  %5271 = vmatprep.mubr.msk.f32.mxu0 %vm5906_vm0, %v5905_v1 }
 0x50e   : > { %5286 = vmatprep.subr.bf16.mxu0 %v5905_v1  ;;  %5214 = vmatmul.mubr.msk.f32.vlgmr.msra.gmra.mrb[10].mxu1 %vm1889_vm12, %v6250_v11 }
 0x50f   : > { %5272 = vmatmul.mubr.msk.f32.vlgmr.msra.gmra.mrb[18].mxu0 %vm1889_vm12, %v6378_v2  ;;  %5216 = vmatprep.subr.bf16.mxu1 %v5905_v1 }
 0x510   : > { %5287 = vmatpush3.bf16.msra.mxu0 %v5595_v40  ;;  %5294 = vmatprep.mubr.msk.bf16.mxu0 %vm5906_vm0, %v5905_v1 }
 0x511   : > { %5288 = vmatprep.subr.bf16.mxu0 %v5905_v1  ;;  %5217 = vmatpush3.bf16.msra.mxu1 %v5599_v3 }
 0x512   : > { %5218 = vmatprep.subr.bf16.mxu1 %v5905_v1  ;;  %5224 = vmatprep.mubr.msk.bf16.mxu1 %vm5906_vm0, %v5905_v1 }
 0x514   : > { %5289 = vmatpush3.bf16.msra.mxu0 %v5596_v41 }
 0x515   : > { %5290 = vmatprep.subr.bf16.mxu0 %v5905_v1  ;;  %5219 = vmatpush3.bf16.msra.mxu1 %v5600_v42 }
 0x516   : > { %5220 = vmatprep.subr.bf16.mxu1 %v5905_v1 }
 0x518   : > { %5291 = vmatpush3.bf16.msra.mxu0 %v5597_v43  ;;  %v5620_v43 = vld [vmem:[#allocation7] sm:$0xff]  }
 0x519   : > { %5292 = vmatprep.subr.bf16.mxu0 %v5905_v1  ;;  %5221 = vmatpush3.bf16.msra.mxu1 %v5601_v44  ;;  %v5621_v44 = vld [vmem:[#allocation7 + $0x48] sm:$0xff]  }
 0x51a   : > { %5222 = vmatprep.subr.bf16.mxu1 %v5905_v1 }
 0x51c   : > { %5293 = vmatpush3.bf16.msra.mxu0 %v5598_v45  ;;  %v5622_v45 = vld [vmem:[#allocation7 + $0x8] sm:$0xff]  }
 0x51d   : > { %5298 = vmatprep.subr.mxu0 %v5905_v1  ;;  %5223 = vmatpush3.bf16.msra.mxu1 %v5602_v47  ;;  %v5626_v47 = vld [vmem:[#allocation7 + $0x10] sm:$0xff]  }
 0x51e   : > { %5228 = vmatprep.subr.bf16.mxu1 %v5905_v1 }
 0x51f   : > { %5295 = vmatmul.mubr.msk.bf16.vlgmr.msra.gmra.mrb[20].mxu0 %vm1440_vm8, %v2188_v46 }
 0x520   : > { %5300 = vmatprep.mubr.msk.f32.mxu0 %vm5906_vm0, %v5905_v1 }
 0x5dd   : > { %v1959_v48 = vpop.f32.mrb[8].mxu1 }
 0x5de   : > { %v5210_v49 = vpop.f32.mrb[9].mxu1  ;;  %v2334_v50 = vpop.f32.mrb[16].mxu0  ;;  %v1963_v62 = vpack.c.bf16 %v1959_v48, %v1959_v48  ;;  %v5629_v48 = vld [vmem:[#allocation7 + $0x58] sm:$0xff]  }
 0x5df   : > { %v5256_v51 = vpop.f32.mrb[17].mxu0  ;;  %v2338_v16 = vpack.c.bf16 %v2334_v50, %v2334_v50  ;;  %v5630_v49 = vld [vmem:[#allocation7 + $0x18] sm:$0xff]   ;;  %v5633_v50 = vld [vmem:[#allocation7 + $0x60] sm:$0xff]  }
 0x5e0   : > { %v5634_v51 = vld [vmem:[#allocation7 + $0x20] sm:$0xff]  }
 0x5e1   : > { %v2040_v52 = vpop.f32.mrb[10].mxu1 }
 0x5e2   : > { %v2044_v54 = vpack.c.bf16 %v2040_v52, %v2040_v52  ;;  %v5215_v55 = vpop.f32.mrb[11].mxu1  ;;  %v6417_v56 = vpop.f32.mrb[18].mxu0  ;;  %v5637_v52 = vld [vmem:[#allocation7 + $0x68] sm:$0xff]  }
 0x5e3   : > { %v5273_v57 = vpop.f32.mrb[19].mxu0  ;;  %v2493_v21 = vpack.c.bf16 %v6417_v56, %v6417_v56  ;;  %v5643_v55 = vld [vmem:[#allocation7 + $0xe8] sm:$0xff]  }
 0x5e4   : > { %5225 = vmatmul.mubr.msk.bf16.vlgmr.msra.gmra.mrb[12].mxu1 %vm1440_vm8, %v2044_v54  ;;  %v5642_v54 = vld [vmem:[#allocation7 + $0x30] sm:$0xff]   ;;  %v5644_v56 = vld [vmem:[#allocation7 + $0xa8] sm:$0xff]   ;;  %v5645_v57 = vld [vmem:[#allocation7 + $0x78] sm:$0xff]  }
 0x5e5   : > { %5229 = vmatpush3.bf16.msra.mxu1 %v5603_v53  ;;  %5236 = vmatprep.mubr.msk.bf16.mxu1 %vm5906_vm0, %v5905_v1  ;;  %v5638_v53 = vld [vmem:[#allocation7 + $0x28] sm:$0xff]  }
 0x5e6   : > { %5230 = vmatprep.subr.bf16.mxu1 %v5905_v1 }
 0x5e9   : > { %5231 = vmatpush3.bf16.msra.mxu1 %v5604_v58  ;;  %v5646_v58 = vld [vmem:[#allocation7 + $0x38] sm:$0xff]  }
 0x5ea   : > { %5232 = vmatprep.subr.bf16.mxu1 %v5905_v1 }
 0x5ed   : > { %5233 = vmatpush3.bf16.msra.mxu1 %v5605_v59  ;;  %v5647_v59 = vld [vmem:[#allocation7 + $0xf0] sm:$0xff]  }
 0x5ee   : > { %5234 = vmatprep.subr.bf16.mxu1 %v5905_v1 }
 0x5f1   : > { %5235 = vmatpush3.bf16.msra.mxu1 %v5606_v60  ;;  %v5648_v60 = vld [vmem:[#allocation7 + $0xb0] sm:$0xff]  }
 0x5f2   : > { %v6425_v63 = vpop.f32.mrb[20].mxu0  ;;  %5240 = vmatprep.subr.bf16.mxu1 %v5905_v1 }
 0x5f3   : > { %v5296_v0 = vpop.f32.mrb[21].mxu0 }
 0x5f4   : > { %v2657_v5 = vpop.f32.mrb[22].mxu0  ;;  %5237 = vmatmul.mubr.msk.bf16.vlgmr.msra.gmra.mrb[12].mxu1 %vm1440_vm8, %v1963_v62  ;;  %v5651_v62 = vld [vmem:[#allocation7 + $0xb8] sm:$0xff]  }
 0x5f5   : > { %v5297_v6 = vpop.f32.mrb[23].mxu0  ;;  %5241 = vmatpush3.bf16.msra.mxu1 %v5607_v61  ;;  %5248 = vmatprep.mubr.msk.bf16.mxu1 %vm5906_vm0, %v5905_v1  ;;  %v5649_v61 = vld [vmem:[#allocation7 + $0xf8] sm:$0xff]  }
 0x5f6   : > { %5242 = vmatprep.subr.bf16.mxu1 %v5905_v1 }
 0x5f9   : > { %5243 = vmatpush3.bf16.msra.mxu1 %v5608_v7 }
 0x5fa   : > { %5244 = vmatprep.subr.bf16.mxu1 %v5905_v1 }
 0x5fd   : > { %5245 = vmatpush3.bf16.msra.mxu1 %v5609_v8 }
 0x5fe   : > { %5246 = vmatprep.subr.bf16.mxu1 %v5905_v1 }
 0x601   : > { %5247 = vmatpush3.bf16.msra.mxu1 %v5610_v9  ;;  %v5650_v9 = vld [vmem:[#allocation7 + $0x100] sm:$0xff]  }
 0x602   : > { %5257 = vmatprep.subr.bf16.mxu1 %v5905_v1 }
 0x604   : > { %5249 = vmatmul.mubr.msk.bf16.vlgmr.msra.gmra.mrb[12].mxu1 %vm1440_vm8, %v2188_v46  ;;  %v5625_v46 = vld [vmem:[#allocation7 + $0x50] sm:$0xff]  }
 0x605   : > { %5258 = vmatpush3.bf16.msra.mxu1 %v5611_v10  ;;  %5265 = vmatprep.mubr.msk.bf16.mxu1 %vm5906_vm0, %v5905_v1 }
 0x606   : > { %5259 = vmatprep.subr.bf16.mxu1 %v5905_v1 }
 0x609   : > { %5260 = vmatpush3.bf16.msra.mxu1 %v5612_v12 }
 0x60a   : > { %5261 = vmatprep.subr.bf16.mxu1 %v5905_v1 }
 0x60d   : > { %5262 = vmatpush3.bf16.msra.mxu1 %v5613_v13 }
 0x60e   : > { %5263 = vmatprep.subr.bf16.mxu1 %v5905_v1 }
 0x611   : > { %5264 = vmatpush3.bf16.msra.mxu1 %v5614_v15  ;;  %v5652_v15 = vld [vmem:[#allocation7 + $0x108] sm:$0xff]  }
 0x612   : > { %5274 = vmatprep.subr.bf16.mxu1 %v5905_v1 }
 0x614   : > { %5266 = vmatmul.mubr.msk.bf16.vlgmr.msra.gmra.mrb[12].mxu1 %vm1440_vm8, %v2338_v16 }
 0x615   : > { %5275 = vmatpush3.bf16.msra.mxu1 %v5615_v17  ;;  %5282 = vmatprep.mubr.msk.bf16.mxu1 %vm5906_vm0, %v5905_v1 }
 0x616   : > { %5276 = vmatprep.subr.bf16.mxu1 %v5905_v1 }
 0x619   : > { %5277 = vmatpush3.bf16.msra.mxu1 %v5616_v18 }
 0x61a   : > { %5278 = vmatprep.subr.bf16.mxu1 %v5905_v1 }
 0x61d   : > { %5279 = vmatpush3.bf16.msra.mxu1 %v5617_v19  ;;  %v5653_v19 = vld [vmem:[#allocation7 + $0x110] sm:$0xff]  }
 0x61e   : > { %5280 = vmatprep.subr.bf16.mxu1 %v5905_v1 }
 0x621   : > { %5281 = vmatpush3.bf16.msra.mxu1 %v5618_v20 }
 0x622   : > { %4990 = vmatprep.subr.bf16.mxu1 %v5623_v22  ;;  %v5655_v22 = vld [vmem:[#allocation7 + $0x120] sm:$0xff]  }
 0x624   : > { %5283 = vmatmul.mubr.msk.bf16.vlgmr.msra.gmra.mrb[12].mxu1 %vm1440_vm8, %v2493_v21  ;;  %v5654_v21 = vld [vmem:[#allocation7 + $0x118] sm:$0xff]  }
 0x625   : > { %4991 = vmatpush3.bf16.msra.mxu1 %v5624_v23  ;;  %v5656_v23 = vld [vmem:[#allocation7 + $0x128] sm:$0xff]  }
 0x626   : > { %4992 = vmatprep.subr.bf16.mxu1 %v5627_v24  ;;  %v5657_v24 = vld [vmem:[#allocation7 + $0x130] sm:$0xff]  }
 0x629   : > { %4993 = vmatpush3.bf16.msra.mxu1 %v5628_v25  ;;  %v5658_v25 = vld [vmem:[#allocation7 + $0x138] sm:$0xff]  }
 0x62a   : > { %4994 = vmatprep.subr.bf16.mxu1 %v5631_v26 }
 0x62d   : > { %4995 = vmatpush3.bf16.msra.mxu1 %v5632_v27 }
 0x62e   : > { %4996 = vmatprep.subr.bf16.mxu1 %v5635_v28 }
 0x631   : > { %4997 = vmatpush3.bf16.msra.mxu1 %v5636_v29 }
 0x632   : > { %4998 = vmatprep.subr.bf16.mxu1 %v5639_v32 }
 0x635   : > { %4999 = vmatpush3.bf16.msra.mxu1 %v5640_v33 }
 0x636   : > { %5000 = vmatprep.subr.bf16.mxu1 %v5643_v55  ;;  %v5678_v55 = vld [vmem:[%s6758_s25 + $0xa8] sm:$0xff]  }
 0x639   : > { %5001 = vmatpush3.bf16.msra.mxu1 %v5644_v56 }
 0x63a   : > { %5002 = vmatprep.subr.bf16.mxu1 %v5647_v59 }
 0x63d   : > { %5003 = vmatpush3.bf16.msra.mxu1 %v5648_v60 }
 0x63e   : > { %5004 = vmatprep.subr.bf16.mxu1 %v5649_v61  ;;  %v5659_v61 = vld [vmem:[%s6758_s25 + $0x40] sm:$0xff]  }
 0x641   : > { %5005 = vmatpush3.bf16.msra.mxu1 %v5651_v62  ;;  %v5660_v62 = vld [vmem:[%s6758_s25] sm:$0xff]  }
 0x642   : > { %5338 = vmatprep.subr.mxu1 %v5905_v1 }
 0x6f7   : > { %v2564_v35 = vpop.f32.mrb[12].mxu1 }
 0x6f8   : > { %v2578_v37 = vmul.f32 %v4755_v34, %v2564_v35  ;;  %v5284_v38 = vpop.f32.mrb[13].mxu1 }
 0x6f9   : > { %v2567_v40 = vpop.f32.mrb[14].mxu1 }
 0x6fa   : > { %v2586_v3 = vadd.f32 %v4756_v36, %v2578_v37  ;;  %v5285_v41 = vpop.f32.mrb[15].mxu1 }
 0x6fc   : > { %v6457_v42 = vmax.f32 %v2586_v3, 0.0  ;;  %v4762_v3 = vld [vmem:[%s6750_s17] ss:$0 sm:$0xff] }
 0x6fe   : > { %5299 = vmatpush3.msra.mxu0 %v6457_v42  ;;  %v2958_v17 = vpack.c.bf16 %v6457_v42, %v6457_v42 }
 0x6ff   : > { %5301 = vmatmul.mubr.msk.f32.vlgmr.msra.gmra.mrb[24].mxu0 %vm1889_vm12, %v6368_v39  ;;  %5303 = vmatprep.subr.mxu0 %v5905_v1  ;;  %v5619_v39 = vld [vmem:[#allocation7 + $0x40] sm:$0xff]  }
 0x700   : > { %5304 = vmatpush3.msra.mxu0 %v6457_v42  ;;  %5305 = vmatprep.mubr.msk.f32.mxu0 %vm5906_vm0, %v5905_v1 }
 0x701   : > { %5308 = vmatprep.subr.mxu0 %v5905_v1 }
 0x703   : > { %5306 = vmatmul.mubr.msk.f32.vlgmr.msra.gmra.mrb[26].mxu0 %vm1889_vm12, %v6250_v11 }
 0x704   : > { %5309 = vmatpush3.msra.mxu0 %v6457_v42  ;;  %5310 = vmatprep.mubr.msk.f32.mxu0 %vm5906_vm0, %v5905_v1 }
 0x705   : > { %5313 = vmatprep.subr.mxu0 %v5905_v1 }
 0x707   : > { %5311 = vmatmul.mubr.msk.f32.vlgmr.msra.gmra.mrb[28].mxu0 %vm1889_vm12, %v6260_v14 }
 0x708   : > { %5314 = vmatpush3.msra.mxu0 %v6457_v42  ;;  %5315 = vmatprep.mubr.msk.f32.mxu0 %vm5906_vm0, %v5905_v1  ;;  %v4808_v42 = vld [vmem:[%s6749_s16] ss:$0 sm:$0xff] }
 0x709   : > { %4968 = vmatprep.subr.bf16.mxu0 %v5619_v39  ;;  %v2667_v39 = vmul.f32 %v4762_v3, %v6425_v63  ;;  %v5663_v63 = vld [vmem:[%s6758_s25 + $0x80] sm:$0xff]  }
 0x70a   : > { %v4841_v3 = vld [vmem:[%s6823_s0] ss:$0 sm:$0xff]  ;;  %s6829_s0 = sld [smem:[#allocation24_spill]] }
 0x70b   : > { %5316 = vmatmul.mubr.msk.f32.vlgmr.msra.gmra.mrb[30].mxu0 %vm1889_vm12, %v6378_v2  ;;  %v5641_v2 = vld [vmem:[#allocation7 + $0x70] sm:$0xff]  }
 0x70c   : > { %4969 = vmatpush3.bf16.msra.mxu0 %v5620_v43 }
 0x70d   : > { %4970 = vmatprep.subr.bf16.mxu0 %v5621_v44 }
 0x710   : > { %4971 = vmatpush3.bf16.msra.mxu0 %v5622_v45  ;;  %v4763_v45 = vld [vmem:[%s6747_s14] ss:$0 sm:$0xff] }
 0x711   : > { %4972 = vmatprep.subr.bf16.mxu0 %v5625_v46  ;;  %v4809_v46 = vld [vmem:[%s6746_s13] ss:$0 sm:$0xff] }
 0x714   : > { %4973 = vmatpush3.bf16.msra.mxu0 %v5626_v47 }
 0x715   : > { %4974 = vmatprep.subr.bf16.mxu0 %v5629_v48 }
 0x718   : > { %4975 = vmatpush3.bf16.msra.mxu0 %v5630_v49 }
 0x719   : > { %4976 = vmatprep.subr.bf16.mxu0 %v5633_v50  ;;  %v2675_v50 = vadd.f32 %v4763_v45, %v2667_v39  ;;  %v5683_v45 = vld [vmem:[#allocation8 + $0x40] sm:$0xff]  }
 0x71c   : > { %4977 = vmatpush3.bf16.msra.mxu0 %v5634_v51 }
 0x71d   : > { %4978 = vmatprep.subr.bf16.mxu0 %v5637_v52 }
 0x720   : > { %4979 = vmatpush3.bf16.msra.mxu0 %v5638_v53 }
 0x721   : > { %4980 = vmatprep.subr.bf16.mxu0 %v5641_v2  ;;  %v5672_v2 = vld [vmem:[%s6758_s25 + $0x98] sm:$0xff]  }
 0x724   : > { %4981 = vmatpush3.bf16.msra.mxu0 %v5642_v54  ;;  %v5675_v54 = vld [vmem:[%s6758_s25 + $0xa0] sm:$0xff]  }
 0x725   : > { %4982 = vmatprep.subr.bf16.mxu0 %v5645_v57 }
 0x728   : > { %4983 = vmatpush3.bf16.msra.mxu0 %v5646_v58 }
 0x729   : > { %5318 = vmatprep.subr.bf16.mxu0 %v5905_v1 }
 0x7d2   : > { %v2742_v0 = vpop.f32.mrb[24].mxu0 }
 0x7d3   : > { %v5302_v5 = vpop.f32.mrb[25].mxu0  ;;  %v2956_v10 = vpack.c.bf16 %v2742_v0, %v2742_v0  ;;  %v5661_v0 = vld [vmem:[%s6758_s25 + $0x48] sm:$0xff]  }
 0x7d6   : > { %v2812_v6 = vpop.f32.mrb[26].mxu0 }
 0x7d7   : > { %v2957_v7 = vpack.c.bf16 %v2812_v6, %v2812_v6  ;;  %v5307_v8 = vpop.f32.mrb[27].mxu0  ;;  %v5662_v6 = vld [vmem:[%s6758_s25 + $0x8] sm:$0xff]  }
 0x7d8   : > { %v5665_v8 = vld [vmem:[%s6758_s25 + $0x10] sm:$0xff]  }
 0x7d9   : > { %3313 = vmatprep.mubr.bf16.mxu0 %v2957_v7  ;;  %v5664_v7 = vld [vmem:[%s6758_s25 + $0x50] sm:$0xff]  }
 0x7da   : > { %v2882_v12 = vpop.f32.mrb[28].mxu0  ;;  %3314 = vmatmul.mubr.bf16.vlgmr.msra.gmra.mrb[32].mxu0 %v2956_v10  ;;  %v5668_v10 = vld [vmem:[%s6758_s25 + $0x18] sm:$0xff]  }
 0x7db   : > { %v2959_v13 = vpack.c.bf16 %v2882_v12, %v2882_v12  ;;  %5319 = vmatpush3.bf16.msra.mxu0 %v5650_v9  ;;  %v5312_v16 = vpop.f32.mrb[29].mxu0  ;;  %5334 = vmatprep.mubr.msk.bf16.mxu0 %vm5906_vm0, %v5905_v1  ;;  %v5667_v9 = vld [vmem:[%s6758_s25 + $0x58] sm:$0xff]   ;;  %v5670_v12 = vld [vmem:[%s6758_s25 + $0x60] sm:$0xff]  }
 0x7dc   : > { %5320 = vmatprep.subr.bf16.mxu0 %v5905_v1  ;;  %v5674_v16 = vld [vmem:[%s6758_s25 + $0x28] sm:$0xff]  }
 0x7dd   : > { %3353 = vmatprep.mubr.bf16.mxu1 %v2959_v13  ;;  %v5671_v13 = vld [vmem:[%s6758_s25 + $0x20] sm:$0xff]  }
 0x7de   : > { %3354 = vmatmul.mubr.bf16.vlgmr.msra.gmra.mrb[16].mxu1 %v2958_v17  ;;  %v2952_v18 = vpop.f32.mrb[30].mxu0  ;;  %v5676_v17 = vld [vmem:[%s6758_s25 + $0x70] sm:$0xff]  }
 0x7df   : > { %5321 = vmatpush3.bf16.msra.mxu0 %v5652_v15  ;;  %v5317_v20 = vpop.f32.mrb[31].mxu0  ;;  %5340 = vmatprep.mubr.msk.f32.mxu1 %vm5906_vm0, %v5905_v1  ;;  %v2960_v26 = vpack.c.bf16 %v2952_v18, %v2952_v18  ;;  %v5673_v15 = vld [vmem:[%s6758_s25 + $0x68] sm:$0xff]   ;;  %v5677_v18 = vld [vmem:[%s6758_s25 + $0x30] sm:$0xff]  }
 0x7e0   : > { %5322 = vmatprep.subr.bf16.mxu0 %v5905_v1  ;;  %v5680_v20 = vld [vmem:[%s6758_s25 + $0x38] sm:$0xff]  }
 0x7e3   : > { %5323 = vmatpush3.bf16.msra.mxu0 %v5653_v19  ;;  %v5679_v19 = vld [vmem:[%s6758_s25 + $0x78] sm:$0xff]  }
 0x7e4   : > { %5324 = vmatprep.subr.bf16.mxu0 %v5905_v1 }
 0x7e7   : > { %5325 = vmatpush3.bf16.msra.mxu0 %v5654_v21  ;;  %v5681_v21 = vld [vmem:[%s6758_s25 + $0xb0] sm:$0xff]  }
 0x7e8   : > { %5326 = vmatprep.subr.bf16.mxu0 %v5905_v1 }
 0x7eb   : > { %5327 = vmatpush3.bf16.msra.mxu0 %v5655_v22  ;;  %v5682_v22 = vld [vmem:[%s6758_s25 + $0xb8] sm:$0xff]  }
 0x7ec   : > { %5328 = vmatprep.subr.bf16.mxu0 %v5905_v1 }
 0x7ef   : > { %5329 = vmatpush3.bf16.msra.mxu0 %v5656_v23 }
 0x7f0   : > { %5330 = vmatprep.subr.bf16.mxu0 %v5905_v1 }
 0x7f3   : > { %5331 = vmatpush3.bf16.msra.mxu0 %v5657_v24 }
 0x7f4   : > { %5332 = vmatprep.subr.bf16.mxu0 %v5905_v1 }
 0x7f7   : > { %5333 = vmatpush3.bf16.msra.mxu0 %v5658_v25 }
 0x7f8   : > { %5358 = vmatprep.subr.bf16.mxu0 %v5905_v1 }
 0x7fa   : > { %5335 = vmatmul.mubr.bf16.vlgmr.msra.gmra.mrb[36].mxu0 %v2960_v26 }
 0x7fb   : > { %5374 = vmatprep.mubr.msk.bf16.mxu0 %vm5906_vm0, %v5905_v1  ;;  %5359 = vmatpush3.bf16.msra.mxu0 %v5663_v63  ;;  %v5693_v63 = vld [vmem:[#allocation8 + $0x18] sm:$0xff]  }
 0x7fc   : > { %5360 = vmatprep.subr.bf16.mxu0 %v5905_v1 }
 0x8ad   : > { %v4984_v27 = vpop.f32.mrb[32].mxu0 }
 0x8ae   : > { %v4985_v28 = vpop.f32.mrb[33].mxu0 }
 0x8af   : > { %v4986_v29 = vadd.f32 %v4985_v28, %v4984_v27  ;;  %v4987_v32 = vpop.f32.mrb[34].mxu0 }
 0x8b0   : > { %v4988_v33 = vpop.f32.mrb[35].mxu0 }
 0x8b1   : > { %v5006_v34 = vpop.f32.mrb[16].mxu1 }
 0x8b2   : > { %v5007_v35 = vpop.f32.mrb[17].mxu1 }
 0x8b3   : > { %v5008_v36 = vadd.f32 %v5007_v35, %v5006_v34  ;;  %v5009_v37 = vpop.f32.mrb[18].mxu1 }
 0x8b4   : > { %v5010_v38 = vpop.f32.mrb[19].mxu1  ;;  %v4840_v37 = vld [vmem:[%s6756_s23] ss:$0 sm:$0xff] }
 0x8b5   : > { %v3356_v40 = vadd.f32 %v5008_v36, %v4986_v29 }
 0x8cd   : > { %v3395_v41 = vpop.f32.mrb[36].mxu0 }
 0x8ce   : > { %v3396_v43 = vadd.f32 %v3395_v41, %v3356_v40  ;;  %v5336_v44 = vpop.f32.mrb[37].mxu0 }
 0x8cf   : > { %v3398_v47 = vpop.f32.mrb[38].mxu0 }
 0x8d0   : > { %v3408_v48 = vmul.f32 %v4808_v42, %v3396_v43  ;;  %v5337_v49 = vpop.f32.mrb[39].mxu0 }
 0x8d1   : > { %v5686_v49 = vld [vmem:[#allocation8 + $0x80] sm:$0xff]  }
 0x8d2   : > { %v3416_v51 = vadd.f32 %v4809_v46, %v3408_v48  ;;  %v5684_v46 = vld [vmem:[#allocation8] sm:$0xff]   ;;  %v5685_v48 = vld [vmem:[#allocation8 + $0x48] sm:$0xff]  }
 0x8d4   : > { %v3417_v52 = vadd.f32 %v3416_v51, %v2675_v50  ;;  %v5687_v50 = vld [vmem:[#allocation8 + $0x8] sm:$0xff]   ;;  %v5688_v51 = vld [vmem:[#allocation8 + $0x50] sm:$0xff]  }
 0x8d6   : > { %v3418_v53 = vmax.f32 %v3417_v52, 0.0  ;;  %v5689_v52 = vld [vmem:[#allocation8 + $0x88] sm:$0xff]  }
 0x8d8   : > { %5339 = vmatpush3.msra.mxu1 %v3418_v53 }
 0x8d9   : > { %5341 = vmatmul.mubr.msk.f32.vlgmr.msra.gmra.mrb[20].mxu1 %vm1889_vm12, %v6349_v30  ;;  %5343 = vmatprep.subr.mxu1 %v5905_v1  ;;  %v5666_v30 = vld [vmem:[%s6758_s25 + $0x88] sm:$0xff]  }
 0x8da   : > { %5344 = vmatpush3.msra.mxu1 %v3418_v53  ;;  %5345 = vmatprep.mubr.msk.f32.mxu1 %vm5906_vm0, %v5905_v1  ;;  %v5692_v53 = vld [vmem:[#allocation8 + $0x90] sm:$0xff]  }
 0x8db   : > { %5348 = vmatprep.subr.mxu1 %v5905_v1  ;;  %5361 = vmatpush3.bf16.msra.mxu0 %v5666_v30  ;;  %v5694_v30 = vld [vmem:[#allocation8 + $0x60] sm:$0xff]  }
 0x8dc   : > { %5362 = vmatprep.subr.bf16.mxu0 %v5905_v1 }
 0x8dd   : > { %5346 = vmatmul.mubr.msk.f32.vlgmr.msra.gmra.mrb[22].mxu1 %vm1889_vm12, %v6352_v31  ;;  %v5669_v31 = vld [vmem:[%s6758_s25 + $0x90] sm:$0xff]  }
 0x8de   : > { %5350 = vmatprep.mubr.msk.f32.mxu1 %vm5906_vm0, %v5905_v1 }
 0x8df   : > { %5363 = vmatpush3.bf16.msra.mxu0 %v5669_v31  ;;  %v5695_v31 = vld [vmem:[#allocation8 + $0x98] sm:$0xff]  }
 0x8e0   : > { %5364 = vmatprep.subr.bf16.mxu0 %v5905_v1 }
 0x8e3   : > { %5365 = vmatpush3.bf16.msra.mxu0 %v5672_v2  ;;  %v5696_v2 = vld [vmem:[#allocation8 + $0x20] sm:$0xff]  }
 0x8e4   : > { %5366 = vmatprep.subr.bf16.mxu0 %v5905_v1 }
 0x8e7   : > { %5367 = vmatpush3.bf16.msra.mxu0 %v5675_v54  ;;  %v5697_v54 = vld [vmem:[#allocation8 + $0x68] sm:$0xff]  }
 0x8e8   : > { %5368 = vmatprep.subr.bf16.mxu0 %v5905_v1 }
 0x8eb   : > { %5369 = vmatpush3.bf16.msra.mxu0 %v5678_v55  ;;  %v5698_v55 = vld [vmem:[#allocation8 + $0xa0] sm:$0xff]  }
 0x8ec   : > { %5370 = vmatprep.subr.bf16.mxu0 %v5905_v1 }
 0x8ef   : > { %5371 = vmatpush3.bf16.msra.mxu0 %v5681_v21  ;;  %v4870_v21 = vld [vmem:[%s6824_s3] ss:$0 sm:$0xff]  ;;  %s4565_s3 = sshll.u32 %s869_s30, 4  ;;  %s6693_s3 = int_to_ptr.vmem [resolvable:$true] %s4565_s3 }
 0x8f0   : > { %5372 = vmatprep.subr.bf16.mxu0 %v5905_v1  ;;  %s5823_s5 = scalar_lea.vmem %s6693_s3, 16  ;;  %p5830_p6 = scmp.lt.s32.totalorder %s6693_s3, %s5828_s7 }
 0x8f1   : > { %p5824_p8 = scmp.ne.s32.totalorder %s6693_s3, %s5823_s5  ;;  %p5831_p9 = scmp.lt.s32.totalorder %s5829_s4, %s5823_s5 }
 0x8f3   : > { %5373 = vmatpush3.bf16.msra.mxu0 %v5682_v22  ;;  %p5825_p13 = pnand %p5824_p8, %p6831_p11  ;;  %p5832_p5 = por %p5831_p9, %p5830_p6 }
 0x8f4   : > { %5383 = vmatprep.subr.mxu0 %v5905_v1 }
 0x8f5   : > { %p5826_p1 = pneg %p5825_p13 }
 0x8f7   : > { %p5833_p0 = pnand %p5832_p5, %p5826_p1 }
 0x9ac   : > { %v3487_v56 = vpop.f32.mrb[20].mxu1 }
 0x9ad   : > { %v5342_v57 = vpop.f32.mrb[21].mxu1 }
 0x9ae   : > { %v5700_v57 = vld [vmem:[#allocation8 + $0x70] sm:$0xff]  }
 0x9b0   : > { %v3559_v58 = vpop.f32.mrb[22].mxu1 }
 0x9b1   : > { %v6545_v59 = vmax.f32 %v3487_v56, %v3559_v58  ;;  %v5347_v60 = vpop.f32.mrb[23].mxu1  ;;  %v5699_v56 = vld [vmem:[#allocation8 + $0x28] sm:$0xff]  }
 0x9b2   : > { %v5701_v58 = vld [vmem:[#allocation8 + $0xa8] sm:$0xff]   ;;  %v5702_v60 = vld [vmem:[#allocation8 + $0x30] sm:$0xff]  }
 0x9b3   : > { %5349 = vmatpush3.msk.msra.mxu1 %vm3567_vm14, %v6545_v59  ;;  %v3714_v5 = vpack.c.bf16 %v6545_v59, %v6545_v59 }
 0x9b4   : > { %5351 = vmatmul.mubr.msk.f32.vlgmr.msra.gmra.mrb[24].mxu1 %vm3564_vm15, %v6250_v11  ;;  %5353 = vmatprep.subr.mxu1 %v5905_v1 }
 0x9b5   : > { %5354 = vmatpush3.msk.msra.mxu1 %vm3567_vm14, %v6545_v59  ;;  %5355 = vmatprep.mubr.msk.f32.mxu1 %vm5906_vm0, %v5905_v1 }
 0x9b6   : > { %5029 = vmatprep.subr.bf16.mxu1 %v5659_v61  ;;  %v5703_v61 = vld [vmem:[#allocation8 + $0x78] sm:$0xff]  }
 0x9b8   : > { %5356 = vmatmul.mubr.msk.f32.vlgmr.msra.gmra.mrb[26].mxu1 %vm3564_vm15, %v6260_v14 }
 0x9b9   : > { %3940 = vmatprep.mubr.bf16.mxu1 %v3714_v5  ;;  %5030 = vmatpush3.bf16.msra.mxu1 %v5660_v62  ;;  %v5704_v62 = vld [vmem:[#allocation8 + $0xb0] sm:$0xff]   ;;  %v5706_v5 = vld [vmem:[#allocation8 + $0xb8] sm:$0xff]  }
 0x9ba   : > { %5031 = vmatprep.subr.bf16.mxu1 %v5661_v0  ;;  %v5705_v0 = vld [vmem:[#allocation8 + $0x38] sm:$0xff]  }
 0x9bd   : > { %5032 = vmatpush3.bf16.msra.mxu1 %v5662_v6 }
 0x9be   : > { %5033 = vmatprep.subr.bf16.mxu1 %v5664_v7 }
 0x9c1   : > { %5034 = vmatpush3.bf16.msra.mxu1 %v5665_v8 }
 0x9c2   : > { %5035 = vmatprep.subr.bf16.mxu1 %v5667_v9 }
 0x9c5   : > { %5036 = vmatpush3.bf16.msra.mxu1 %v5668_v10 }
 0x9c6   : > { %5037 = vmatprep.subr.bf16.mxu1 %v5670_v12 }
 0x9c9   : > { %5038 = vmatpush3.bf16.msra.mxu1 %v5671_v13 }
 0x9ca   : > { %5039 = vmatprep.subr.bf16.mxu1 %v5673_v15 }
 0x9cd   : > { %5040 = vmatpush3.bf16.msra.mxu1 %v5674_v16 }
 0x9ce   : > { %5041 = vmatprep.subr.bf16.mxu1 %v5676_v17 }
 0x9d1   : > { %5042 = vmatpush3.bf16.msra.mxu1 %v5677_v18 }
 0x9d2   : > { %5043 = vmatprep.subr.bf16.mxu1 %v5679_v19 }
 0x9d5   : > { %5044 = vmatpush3.bf16.msra.mxu1 %v5680_v20 }
 0x9d6   : > { %5378 = vmatprep.subr.mxu1 %v5905_v1 }
 0xa87   : > { %v3637_v23 = vpop.f32.mrb[24].mxu1 }
 0xa88   : > { %v3713_v24 = vpack.c.bf16 %v3637_v23, %v3637_v23  ;;  %v5352_v25 = vpop.f32.mrb[25].mxu1 }
 0xa89   : > { %v4871_v25 = vld [vmem:[%s6825_s21] ss:$0 sm:$0xff]  ;;  %s6830_s21 = sld [smem:[#allocation38_spill]] }
 0xa8a   : > { %3941 = vmatmul.mubr.bf16.vlgmr.msra.gmra.mrb[28].mxu1 %v3713_v24 }
 0xa8b   : > { %v3709_v26 = vpop.f32.mrb[26].mxu1  ;;  %5380 = vmatprep.mubr.msk.f32.mxu1 %vm5906_vm0, %v5905_v1 }
 0xa8c   : > { %v3715_v27 = vpack.c.bf16 %v3709_v26, %v3709_v26  ;;  %v5357_v28 = vpop.f32.mrb[27].mxu1 }
 0xa8e   : > { %5375 = vmatmul.mubr.bf16.vlgmr.msra.gmra.mrb[40].mxu0 %v3715_v27 }
 0xa8f   : > { %5385 = vmatprep.mubr.msk.f32.mxu0 %vm5906_vm0, %v5905_v1 }
 0xb5d   : > { %v5045_v29 = vpop.f32.mrb[28].mxu1 }
 0xb5e   : > { %v5046_v32 = vpop.f32.mrb[29].mxu1 }
 0xb5f   : > { %v5047_v33 = vadd.f32 %v5046_v32, %v5045_v29  ;;  %v5048_v34 = vpop.f32.mrb[30].mxu1 }
 0xb60   : > { %v5049_v35 = vpop.f32.mrb[31].mxu1 }
 0xb61   : > { %v3982_v36 = vpop.f32.mrb[40].mxu0 }
 0xb62   : > { %v3983_v38 = vadd.f32 %v5047_v33, %v3982_v36  ;;  %v5376_v40 = vpop.f32.mrb[41].mxu0 }
 0xb63   : > { %v3985_v41 = vpop.f32.mrb[42].mxu0 }
 0xb64   : > { %v3995_v42 = vmul.f32 %v4840_v37, %v3983_v38  ;;  %v5377_v39 = vpop.f32.mrb[43].mxu0  ;;  %v4468_v41 = vld [vmem:[%s6826_s28 + $0x10] sm:$0xff] }
 0xb65   : > { %v4469_v39 = vld [vmem:[%s6826_s28 + $0x18] sm:$0xff] }
 0xb66   : > { %v4003_v43 = vadd.f32 %v4841_v3, %v3995_v42  ;;  %v4467_v3 = vld [vmem:[%s6826_s28 + $0x8] sm:$0xff] }
 0xb68   : > { %v4004_v44 = vmax.f32 %v4003_v43, 0.0  ;;  %v5453_v43 = vpack.c.bf16 %v4469_v39, %v4468_v41 }
 0xb6a   : > { %5379 = vmatpush3.msk.msra.mxu1 %vm3567_vm14, %v4004_v44  ;;  %5384 = vmatpush3.msk.msra.mxu0 %vm3567_vm14, %v4004_v44  ;;  %v4149_v47 = vpack.c.bf16 %v4004_v44, %v4004_v44  ;;  %v4470_v44 = vld [vmem:[%s6826_s28 + $0x20] sm:$0xff] }
 0xb6b   : > { %5381 = vmatmul.mubr.msk.f32.vlgmr.msra.gmra.mrb[32].mxu1 %vm3564_vm15, %v6250_v11  ;;  %5386 = vmatmul.mubr.msk.f32.vlgmr.msra.gmra.mrb[44].mxu0 %vm3564_vm15, %v6260_v14  ;;  %v5690_v11 = vld [vmem:[#allocation8 + $0x10] sm:$0xff]   ;;  %v5691_v14 = vld [vmem:[#allocation8 + $0x58] sm:$0xff]  }
 0xb6c   : > { %4375 = vmatprep.mubr.bf16.mxu1 %v4149_v47  ;;  %5064 = vmatprep.subr.bf16.mxu1 %v5683_v45  ;;  %v4471_v45 = vld [vmem:[%s6826_s28 + $0x28] sm:$0xff]  ;;  %v4472_v47 = vld [vmem:[%s6826_s28 + $0x30] sm:$0xff] }
 0xb6d   : > { %5065 = vmatpush3.bf16.msra.mxu1 %v5684_v46  ;;  %5388 = vmatprep.subr.bf16.mxu0 %v5905_v1  ;;  %v5456_v46 = vpack.c.bf16 %v4471_v45, %v4470_v44 }
 0xb6e   : > { %5066 = vmatprep.subr.bf16.mxu1 %v5685_v48  ;;  %5389 = vmatpush3.bf16.msra.mxu0 %v5686_v49  ;;  %v4473_v48 = vld [vmem:[%s6826_s28 + $0x38] sm:$0xff] }
 0xb6f   : > { %5390 = vmatprep.subr.bf16.mxu0 %v5905_v1  ;;  %5404 = vmatprep.mubr.msk.bf16.mxu0 %vm5906_vm0, %v5905_v1  ;;  %v5459_v49 = vpack.c.bf16 %v4473_v48, %v4472_v47 }
 0xb71   : > { %5067 = vmatpush3.bf16.msra.mxu1 %v5687_v50 }
 0xb72   : > { %5068 = vmatprep.subr.bf16.mxu1 %v5688_v51  ;;  %5391 = vmatpush3.bf16.msra.mxu0 %v5689_v52 }
 0xb73   : > { %5392 = vmatprep.subr.bf16.mxu0 %v5905_v1 }
 0xb75   : > { %5069 = vmatpush3.bf16.msra.mxu1 %v5690_v11 }
 0xb76   : > { %5070 = vmatprep.subr.bf16.mxu1 %v5691_v14  ;;  %5393 = vmatpush3.bf16.msra.mxu0 %v5692_v53 }
 0xb77   : > { %5394 = vmatprep.subr.bf16.mxu0 %v5905_v1 }
 0xb79   : > { %5071 = vmatpush3.bf16.msra.mxu1 %v5693_v63 }
 0xb7a   : > { %5072 = vmatprep.subr.bf16.mxu1 %v5694_v30  ;;  %5395 = vmatpush3.bf16.msra.mxu0 %v5695_v31 }
 0xb7b   : > { %5396 = vmatprep.subr.bf16.mxu0 %v5905_v1 }
 0xb7d   : > { %5073 = vmatpush3.bf16.msra.mxu1 %v5696_v2 }
 0xb7e   : > { %5074 = vmatprep.subr.bf16.mxu1 %v5697_v54  ;;  %5397 = vmatpush3.bf16.msra.mxu0 %v5698_v55 }
 0xb7f   : > { %5398 = vmatprep.subr.bf16.mxu0 %v5905_v1 }
 0xb81   : > { %5075 = vmatpush3.bf16.msra.mxu1 %v5699_v56 }
 0xb82   : > { %5076 = vmatprep.subr.bf16.mxu1 %v5700_v57  ;;  %5399 = vmatpush3.bf16.msra.mxu0 %v5701_v58 }
 0xb83   : > { %5400 = vmatprep.subr.bf16.mxu0 %v5905_v1 }
 0xb85   : > { %5077 = vmatpush3.bf16.msra.mxu1 %v5702_v60 }
 0xb86   : > { %5078 = vmatprep.subr.bf16.mxu1 %v5703_v61  ;;  %5401 = vmatpush3.bf16.msra.mxu0 %v5704_v62 }
 0xb87   : > { %5402 = vmatprep.subr.bf16.mxu0 %v5905_v1 }
 0xb89   : > { %5079 = vmatpush3.bf16.msra.mxu1 %v5705_v0 }
 0xb8a   : > { %5403 = vmatpush3.bf16.msra.mxu0 %v5706_v5  ;;  %5449 = vmatprep.subr.bf16.mxu1 %v5907_v4 }
 0xc3e   : > { %v4074_v6 = vpop.f32.mrb[32].mxu1  ;;  %v4144_v7 = vpop.f32.mrb[44].mxu0 }
 0xc3f   : > { %v4148_v8 = vpack.c.bf16 %v4074_v6, %v4074_v6  ;;  %v4150_v9 = vpack.c.bf16 %v4144_v7, %v4144_v7  ;;  %v5382_v10 = vpop.f32.mrb[33].mxu1  ;;  %v5387_v12 = vpop.f32.mrb[45].mxu0 }
 0xc41   : > { %4376 = vmatmul.mubr.bf16.vlgmr.msra.gmra.mrb[36].mxu1 %v4148_v8  ;;  %5405 = vmatmul.mubr.bf16.vlgmr.msra.gmra.mrb[48].mxu0 %v4150_v9 }
 0xc42   : > { %5424 = vmatprep.mubr.msk.f32.mxu1 %vm5906_vm0, %v5905_v1  ;;  %vm4441_vm0 = vcmask 519168  }
 0xd14   : > { %v5080_v13 = vpop.f32.mrb[36].mxu1  ;;  %v4417_v15 = vpop.f32.mrb[48].mxu0 }
 0xd15   : > { %v5081_v16 = vpop.f32.mrb[37].mxu1  ;;  %v5406_v17 = vpop.f32.mrb[49].mxu0 }
 0xd16   : > { %v5082_v18 = vadd.f32 %v5081_v16, %v5080_v13  ;;  %v5083_v19 = vpop.f32.mrb[38].mxu1  ;;  %v4420_v20 = vpop.f32.mrb[50].mxu0 }
 0xd17   : > { %v5084_v22 = vpop.f32.mrb[39].mxu1  ;;  %v5407_v23 = vpop.f32.mrb[51].mxu0 }
 0xd18   : > { %v4418_v24 = vadd.f32 %v5082_v18, %v4417_v15 }
 0xd1a   : > { %v4430_v26 = vmul.f32 %v4870_v21, %v4418_v24 }
 0xd1c   : > { %v4438_v1 = vadd.f32 %v4871_v25, %v4430_v26 }
 0xd1e   : > { %v4439_v27 = vadd.f32 %v4438_v1, %v6545_v59  ;;  %v4466_v59 = vld [vmem:[%s6826_s28] sm:$0xff] }
 0xd1f   : > { %v5450_v42 = vpack.c.bf16 %v4467_v3, %v4466_v59 }
 0xd20   : > { %v4440_v28 = vmax.f32 %v4439_v27, 0.0 }
 0xd21   : > { %5451 = vmatpush3.bf16.msra.mxu1 %v5450_v42 }
 0xd22   : > { %v4442_v29 = vsel %vm4441_vm0, %v4440_v28, -inf  ;;  %5452 = vmatprep.subr.bf16.mxu1 %v5907_v4 }
 0xd23   : > { %4443 = vmax.xlane.f32.xlu0 %v4442_v29 }
 0xd25   : > { %5454 = vmatpush3.bf16.msra.mxu1 %v5453_v43 }
 0xd26   : > { %5455 = vmatprep.subr.bf16.mxu1 %v5907_v4 }
 0xd29   : > { %5457 = vmatpush3.bf16.msra.mxu1 %v5456_v46 }
 0xd2a   : > { %5458 = vmatprep.subr.bf16.mxu1 %v5907_v4  ;;  %v4474_v4 = vld [vmem:[%s6829_s0] sm:$0x1] }
 0xd2d   : > { %5460 = vmatpush3.bf16.msra.mxu1 %v5459_v49 }
 0xdb0   : > { %v4444_v32 = vpop.xlane.xlu0 %4443 }
 0xdb1   : > { %v4445_v33 = vsub.f32 %v4440_v28, %v4444_v32 }
 0xdb3   : > { %v4446_v34 = vmul.f32 1.442695, %v4445_v33 }
 0xdb5   : > { %5707 = vpow2.f32 %v4446_v34 }
 0xdbf   : > { %v5708_v35 = vpop.eup %5707 }
 0xdc0   : > { %v4448_v36 = vsel %vm4441_vm0, %v5708_v35, 0.0 }
 0xdc1   : > { %4449 = vadd.xlane.f32.xlu0 %v4448_v36 }
 0xe4e   : > { %v4450_v37 = vpop.xlane.xlu0 %4449 }
 0xe4f   : > { %5709 = vrcp.f32 %v4450_v37 }
 0xe59   : > { %v5710_v38 = vpop.eup %5709 }
 0xe5a   : > { %v4452_v40 = vmul.f32 %v5710_v38, %v5708_v35 }
 0xe5c   : > { %4454 = vrot.lane.b32.xlu1 %v4452_v40, %s5908_s27 }
 0xece   : > { %v4455_v50 = vpop.permute.xlu1 %4454 }
 0xecf   : > { %v4457_v51 = vmul.f32 %v4455_v50, %v4440_v28 }
 0xed1   : > { %v4459_v52 = vsel %vm4458_vm1, %v4457_v51, 0.0 }
 0xed2   : > { %v4460_v11 = vrot.slane %v4459_v52, 4 }
 0xed4   : > { %v4461_v14 = vadd.f32 %v4460_v11, %v4459_v52 }
 0xed6   : > { %v4462_v53 = vrot.slane %v4461_v14, 2 }
 0xed8   : > { %v4463_v63 = vadd.f32 %v4462_v53, %v4461_v14 }
 0xeda   : > { %v4464_v30 = vrot.slane %v4463_v63, 1 }
 0xedc   : > { %v4465_v31 = vadd.f32 %v4464_v30, %v4463_v63 }
 0xede   : > { %4476 = vrot.lane.b32.xlu1 %v4465_v31, %s5908_s27  ;;  %s6691_s27 = scalar_lea.hbm %s6830_s21, %s4873_s29 }
 0xf50   : > { %v4477_v2 = vpop.permute.xlu1 %4476 }
 0xf51   : > { %5425 = vmatmul.mubr.msk.f32.vlgmr.msra.gmra.mrb[34].mxu1 %vm1440_vm8, %v4477_v2 }
0x1024   : > { %v4546_v54 = vpop.f32.mrb[34].mxu1 }
0x1025   : > { %v4547_v55 = vadd.f32 %v4546_v54, %v4474_v4  ;;  %v5426_v56 = vpop.f32.mrb[35].mxu1 }
0x1027   : > { %4551 = vst.msk [vmem:[%s869_s30] sm:$0x1] %vm4550_vm2, %v4547_v55 }
0x1028   : > { %5836 = shalt.err (!%p5833_p0)
}
0x1029   : > { %s5837_s24 = scalar_lea.hbm %s6691_s27, 16  ;;  %s5841_s29 = scalar_lea.hbm %s6830_s21, 32 }
0x102a   : > { %p5838_p10 = scmp.ne.s32.totalorder %s6691_s27, %s5837_s24  ;;  %p5842_p4 = scmp.lt.u32.totalorder %s6691_s27, %s6830_s21 }
0x102b   : > { %p5843_p12 = scmp.lt.u32.totalorder %s5841_s29, %s5837_s24  ;;  %p5845_p8 = scmp.lt.u32.totalorder %s5837_s24, %s6691_s27 }
0x102c   : > { %p5839_p2 = pnand %p5838_p10, %p6831_p11 }
0x102d   : > { %p5844_p7 = por %p5843_p12, %p5842_p4 }
0x102e   : > { %p5840_p3 = pneg %p5839_p2 }
0x102f   : > { %p5846_p13 = por %p5845_p8, %p5844_p7 }
0x1031   : > { %p5847_p1 = pnand %p5846_p13, %p5840_p3 }
0x1033   : > { %5850 = shalt.err (!%p5847_p1)
}
0x1034   : > { %5509 = dma.vmem_to_hbm [thread:$0]  (%p6831_p11), %s6693_s3, 16, %s6691_s27, %s4553_s11  }
0x1035 PF: > { %s6832_s10 = sld [smem:[#allocation18_spill]]  ;;  %s6833_s5 = sld [smem:[#allocation15_spill]] }
0x1036   : > { %s6834_s9 = sld [smem:[#allocation22_spill]] }
0x103b   : > { %p5536_p6 = scmp.ge.s32.totalorder %s6832_s10, 2  ;;  %s4577_s7 = sand.u32 1, %s6833_s5  }
0x103c   : > { %p6835_p9 = scmp.ne.s32.totalorder %s6834_s9, 0  ;;  %s4578_s4 = scalar_lea.sflag [#allocation4], %s4577_s7 }
0x103e   : > { %p5525_p5 = pnand %p5536_p6, %p6835_p9 }
0x1040   : > { %5880 = dma.done.wait (!%p5525_p5), %s4578_s4, 16  }
0x1041   : > { %5882 = vsyncadd (!%p5525_p5), %s4578_s4, 4294967280  ;;  %s6836_s30 = sld [smem:[#allocation19_spill]]  ;;  %s6837_s7 = sld [smem:[#allocation16_spill]] }
0x1042   : > { %s6838_s4 = sld [smem:[#allocation17_spill]]  ;;  %s6839_s8 = sld [smem:[#allocation20_spill]] }
0x1047   : > { %p40_p0 = scmp.ge.s32.totalorder %s6836_s30, 4  }
0x1049   :  { %42 = sbr.rel (!%p40_p0) target bundleno = 23 (0x17), region = 188 }
0x1050   :  { %4582 = vsyncpa [#allocation3], 1 }
0x1051   :  { %4584 = vsyncpa [#allocation3 + $0x1], 1 }
0x1052   :  { %4585 = vsyncpa [#allocation6], 1 }
0x1053   :  { %4586 = vsyncpa [#allocation9], 1 }
0x1054   :  { %4587 = vsyncpa [#allocation4], 1 }
0x1055   :  { %4589 = vsyncpa [#allocation4 + $0x1], 1 }

</bundles_post_ra>
